<compile_context>
chip_gen: v7x
topology: tpu7x:2x2x1
jax: 0.10.0
libtpu: 0.0.40
codegen_flags: <defaults>
</compile_context>

<pallas_src>
import jax
import jax.numpy as jnp
from jax.experimental import pallas as pl
from jax.experimental.pallas import tpu as pltpu

LANE = 128  # TPU lane width; hidden / output widths are padded to this.


def _round_up(n, m):
    return ((n + m - 1) // m) * m


def _pick_tb(batch, tb_max=1024):
    """Batch tile: multiple of 256 (fills MXU rows on v6e/v7x), large enough to
    amortize the ~0.35us per-step pipeline overhead, but capped so the grid
    keeps >= 2 steps when the batch allows (both v7x TensorCores get work)."""
    if batch <= 256:
        return 256
    half = _round_up(pl.cdiv(batch, 2), 256)
    return max(256, min(tb_max, half))


def _leaky_relu(x, slope=0.2):
    return jnp.where(x > 0, x, slope * x)


def discriminator_kernel(x_ref, w1_ref, b1_ref, w2_ref, b2_ref,
                         w3_ref, b3_ref, w4_ref, b4_ref, o_ref):
    """Fused 4-layer MLP forward for one (TB, real_dim) batch tile.

    x_ref: (TB, real_dim) bf16 (input width unpadded);
    w*_ref: (Kin, Kout_p) bf16, already transposed to (in, out), hidden/out
    widths padded to 128;  b*_ref: (1, Kout_p) f32;
    o_ref: (TB, out_dim) f32 (narrow store -- only the real output columns).
    """
    h = jnp.dot(x_ref[...], w1_ref[...],
                preferred_element_type=jnp.float32) + b1_ref[...]
    h = _leaky_relu(h)
    # TODO(synk): nn.Dropout reproduced in eval-mode semantics (identity);
    # train-mode p-masking with 1/(1-p) scaling would use pltpu.prng_seed /
    # pltpu.prng_random_bits.

    h = jnp.dot(h.astype(jnp.bfloat16), w2_ref[...],
                preferred_element_type=jnp.float32) + b2_ref[...]
    h = _leaky_relu(h)

    h = jnp.dot(h.astype(jnp.bfloat16), w3_ref[...],
                preferred_element_type=jnp.float32) + b3_ref[...]
    h = _leaky_relu(h)

    logits = jnp.dot(h.astype(jnp.bfloat16), w4_ref[...],
                     preferred_element_type=jnp.float32) + b4_ref[...]
    # sigmoid = 1 / (1 + exp(-x)): exp and approx reciprocal both land on EUP.
    probs = pl.reciprocal(1.0 + jnp.exp(-logits), approx=True)
    # Narrow f32 store: only the real out_dim columns hit HBM (masked vst).
    o_ref[...] = probs[:, : o_ref.shape[-1]].astype(o_ref.dtype)


def init_discriminator_params(key, input_dim, h1, h2, h3, out_dim):
    """nn.Linear-style init U(-1/sqrt(fan_in), 1/sqrt(fan_in)); weights stored (in, out)."""
    dims = [(input_dim, h1), (h1, h2), (h2, h3), (h3, out_dim)]
    params = {}
    for i, (fan_in, fan_out) in enumerate(dims, start=1):
        key, kw, kb = jax.random.split(key, 3)
        bound = 1.0 / jnp.sqrt(float(fan_in))
        params[f"w{i}"] = jax.random.uniform(
            kw, (fan_in, fan_out), jnp.float32, -bound, bound)
        params[f"b{i}"] = jax.random.uniform(
            kb, (fan_out,), jnp.float32, -bound, bound)
    return params


def pad_params_for_kernel(params):
    """Pad hidden/output widths to multiples of 128; input width (w1's kin) is
    left unpadded.  Weights -> bf16 (in, out); biases -> (1, Kout_p) f32."""
    padded = {}
    for i in range(1, 5):
        w = params[f"w{i}"]
        b = params[f"b{i}"]
        kin, kout = w.shape
        kin_p = kin if i == 1 else _round_up(kin, LANE)   # layer-1 input unpadded
        kout_p = _round_up(kout, LANE)
        padded[f"w{i}"] = (jnp.zeros((kin_p, kout_p), jnp.bfloat16)
                           .at[:kin, :kout].set(w.astype(jnp.bfloat16)))
        padded[f"b{i}"] = (jnp.zeros((1, kout_p), jnp.float32)
                           .at[0, :kout].set(b))
    return padded


def discriminator_forward(x, padded_params, real_dim, out_dim, tb=None):
    """out = Discriminator(x.view(B, real_dim)).view(B, -1)"""
    B = x.shape[0]
    x2 = x.reshape(B, real_dim).astype(jnp.bfloat16)      # x.view(x.size(0), real_dim)

    if tb is None:
        tb = _pick_tb(B)
    bp = pl.cdiv(B, tb) * tb
    if bp != B:                                           # batch pad only when needed
        x2 = jnp.pad(x2, ((0, bp - B), (0, 0)))

    def resident(shape):
        # Constant block index -> Pallas sees the same block every step and skips
        # the re-DMA, keeping weights/biases VMEM-resident across the grid.
        return pl.BlockSpec(shape, lambda i: (0, 0))

    in_specs = [pl.BlockSpec((tb, real_dim), lambda i: (i, 0))]
    for j in range(1, 5):
        in_specs.append(resident(padded_params[f"w{j}"].shape))
        in_specs.append(resident(padded_params[f"b{j}"].shape))

    out = pl.pallas_call(
        discriminator_kernel,
        out_shape=jax.ShapeDtypeStruct((bp, out_dim), jnp.float32),
        grid=(bp // tb,),
        in_specs=in_specs,
        out_specs=pl.BlockSpec((tb, out_dim), lambda i: (i, 0)),
        compiler_params=pltpu.CompilerParams(
            dimension_semantics=("parallel",),
            vmem_limit_bytes=32 * 1024 * 1024),
    )(x2,
      padded_params["w1"], padded_params["b1"],
      padded_params["w2"], padded_params["b2"],
      padded_params["w3"], padded_params["b3"],
      padded_params["w4"], padded_params["b4"])

    out = out[:B]                                          # drop batch padding
    return out.reshape(B, -1)                              # out.view(out.size(0), -1)


def _reference_forward(x, params, real_dim):
    """Pure-JAX reference mirroring the kernel's bf16-operand / f32-accumulate arithmetic."""
    h = x.reshape(x.shape[0], real_dim).astype(jnp.bfloat16)
    for i in range(1, 4):
        w = params[f"w{i}"].astype(jnp.bfloat16)
        h = jnp.dot(h, w, preferred_element_type=jnp.float32) + params[f"b{i}"]
        h = jnp.where(h > 0, h, 0.2 * h).astype(jnp.bfloat16)
    w4 = params["w4"].astype(jnp.bfloat16)
    logits = jnp.dot(h, w4, preferred_element_type=jnp.float32) + params["b4"]
    return jax.nn.sigmoid(logits)


if __name__ == "__main__":
    # Small, deterministic configuration: Discriminator(input=64, 32, 32, 16, 1, 0.3).
    input_dim, h1, h2, h3, out_dim = 64, 32, 32, 16, 1
    dropout = 0.3            # eval-mode => identity
    real_dim = input_dim
    B = 512                  # -> TB=256, 2 grid steps (both v7x TensorCores get work)

    key = jax.random.PRNGKey(0)
    key_p, key_x = jax.random.split(key)
    params = init_discriminator_params(key_p, input_dim, h1, h2, h3, out_dim)
    padded_params = pad_params_for_kernel(params)

    # x mimics an image batch (NCHW) that gets flattened: 1*8*8 == real_dim
    x = jax.random.normal(key_x, (B, 1, 8, 8), jnp.float32)

    out = discriminator_forward(x, padded_params, real_dim, out_dim)
    out = jax.block_until_ready(out)

    ref = _reference_forward(x, params, real_dim)
    assert out.shape == (B, out_dim), out.shape
    assert jnp.allclose(out, ref, atol=5e-3, rtol=5e-3), \
        float(jnp.max(jnp.abs(out - ref)))

    print("KERNEL_OK")
</pallas_src>

<mosaic_0001>
module attributes {stable_mosaic.version = 11 : i64} {
  func.func @discriminator_kernel(%arg0: i32, %arg1: memref<256x64xbf16, #tpu.memory_space<vmem>>, %arg2: memref<64x128xbf16, #tpu.memory_space<vmem>>, %arg3: memref<1x128xf32, #tpu.memory_space<vmem>>, %arg4: memref<128x128xbf16, #tpu.memory_space<vmem>>, %arg5: memref<1x128xf32, #tpu.memory_space<vmem>>, %arg6: memref<128x128xbf16, #tpu.memory_space<vmem>>, %arg7: memref<1x128xf32, #tpu.memory_space<vmem>>, %arg8: memref<128x128xbf16, #tpu.memory_space<vmem>>, %arg9: memref<1x128xf32, #tpu.memory_space<vmem>>, %arg10: memref<256x1xf32, #tpu.memory_space<vmem>>) attributes {dimension_semantics = [#tpu.dimension_semantics<parallel>], iteration_bounds = array<i64: 2>, scalar_prefetch = 0 : i64, scratch_operands = 0 : i64, tpu.core_type = #tpu.core_type<tc>, window_params = [{transform_indices = @transform_0, window_bounds = array<i64: 256, 64>}, {pipeline_mode = #tpu.pipeline_mode<synchronous>, transform_indices = @transform_1, window_bounds = array<i64: 64, 128>}, {pipeline_mode = #tpu.pipeline_mode<synchronous>, transform_indices = @transform_2, window_bounds = array<i64: 1, 128>}, {pipeline_mode = #tpu.pipeline_mode<synchronous>, transform_indices = @transform_3, window_bounds = array<i64: 128, 128>}, {pipeline_mode = #tpu.pipeline_mode<synchronous>, transform_indices = @transform_4, window_bounds = array<i64: 1, 128>}, {pipeline_mode = #tpu.pipeline_mode<synchronous>, transform_indices = @transform_5, window_bounds = array<i64: 128, 128>}, {pipeline_mode = #tpu.pipeline_mode<synchronous>, transform_indices = @transform_6, window_bounds = array<i64: 1, 128>}, {pipeline_mode = #tpu.pipeline_mode<synchronous>, transform_indices = @transform_7, window_bounds = array<i64: 128, 128>}, {pipeline_mode = #tpu.pipeline_mode<synchronous>, transform_indices = @transform_8, window_bounds = array<i64: 1, 128>}, {transform_indices = @transform_9, window_bounds = array<i64: 256, 1>}]} {
    %c0 = arith.constant 0 : index
    %c0_0 = arith.constant 0 : index
    %0 = vector.load %arg1[%c0, %c0_0] : memref<256x64xbf16, #tpu.memory_space<vmem>>, vector<256x64xbf16>
    %c0_1 = arith.constant 0 : index
    %c0_2 = arith.constant 0 : index
    %1 = vector.load %arg2[%c0_1, %c0_2] : memref<64x128xbf16, #tpu.memory_space<vmem>>, vector<64x128xbf16>
    %cst = arith.constant dense<0.000000e+00> : vector<256x128xf32>
    %2 = tpu.matmul %0, %1, %cst {dimension_numbers = #tpu.dot_dimension_numbers<[1], [0], [0], [1], [0, 0, 1, 1], [], []>} : vector<256x64xbf16>, vector<64x128xbf16>, vector<256x128xf32> -> vector<256x128xf32>
    %c0_3 = arith.constant 0 : index
    %c0_4 = arith.constant 0 : index
    %3 = vector.load %arg3[%c0_3, %c0_4] : memref<1x128xf32, #tpu.memory_space<vmem>>, vector<1x128xf32>
    %4 = vector.broadcast %3 : vector<1x128xf32> to vector<256x128xf32>
    %5 = arith.addf %2, %4 : vector<256x128xf32>
    %cst_5 = arith.constant 0.000000e+00 : f32
    %6 = vector.broadcast %cst_5 : f32 to vector<256x128xf32>
    %7 = arith.cmpf ogt, %5, %6 : vector<256x128xf32>
    %cst_6 = arith.constant 2.000000e-01 : f32
    %8 = vector.broadcast %cst_6 : f32 to vector<256x128xf32>
    %9 = arith.mulf %8, %5 : vector<256x128xf32>
    %10 = arith.select %7, %5, %9 : vector<256x128xi1>, vector<256x128xf32>
    %11 = arith.truncf %10 : vector<256x128xf32> to vector<256x128xbf16>
    %c0_7 = arith.constant 0 : index
    %c0_8 = arith.constant 0 : index
    %12 = vector.load %arg4[%c0_7, %c0_8] : memref<128x128xbf16, #tpu.memory_space<vmem>>, vector<128x128xbf16>
    %cst_9 = arith.constant dense<0.000000e+00> : vector<256x128xf32>
    %13 = tpu.matmul %11, %12, %cst_9 {dimension_numbers = #tpu.dot_dimension_numbers<[1], [0], [0], [1], [0, 0, 1, 1], [], []>} : vector<256x128xbf16>, vector<128x128xbf16>, vector<256x128xf32> -> vector<256x128xf32>
    %c0_10 = arith.constant 0 : index
    %c0_11 = arith.constant 0 : index
    %14 = vector.load %arg5[%c0_10, %c0_11] : memref<1x128xf32, #tpu.memory_space<vmem>>, vector<1x128xf32>
    %15 = vector.broadcast %14 : vector<1x128xf32> to vector<256x128xf32>
    %16 = arith.addf %13, %15 : vector<256x128xf32>
    %cst_12 = arith.constant 0.000000e+00 : f32
    %17 = vector.broadcast %cst_12 : f32 to vector<256x128xf32>
    %18 = arith.cmpf ogt, %16, %17 : vector<256x128xf32>
    %cst_13 = arith.constant 2.000000e-01 : f32
    %19 = vector.broadcast %cst_13 : f32 to vector<256x128xf32>
    %20 = arith.mulf %19, %16 : vector<256x128xf32>
    %21 = arith.select %18, %16, %20 : vector<256x128xi1>, vector<256x128xf32>
    %22 = arith.truncf %21 : vector<256x128xf32> to vector<256x128xbf16>
    %c0_14 = arith.constant 0 : index
    %c0_15 = arith.constant 0 : index
    %23 = vector.load %arg6[%c0_14, %c0_15] : memref<128x128xbf16, #tpu.memory_space<vmem>>, vector<128x128xbf16>
    %cst_16 = arith.constant dense<0.000000e+00> : vector<256x128xf32>
    %24 = tpu.matmul %22, %23, %cst_16 {dimension_numbers = #tpu.dot_dimension_numbers<[1], [0], [0], [1], [0, 0, 1, 1], [], []>} : vector<256x128xbf16>, vector<128x128xbf16>, vector<256x128xf32> -> vector<256x128xf32>
    %c0_17 = arith.constant 0 : index
    %c0_18 = arith.constant 0 : index
    %25 = vector.load %arg7[%c0_17, %c0_18] : memref<1x128xf32, #tpu.memory_space<vmem>>, vector<1x128xf32>
    %26 = vector.broadcast %25 : vector<1x128xf32> to vector<256x128xf32>
    %27 = arith.addf %24, %26 : vector<256x128xf32>
    %cst_19 = arith.constant 0.000000e+00 : f32
    %28 = vector.broadcast %cst_19 : f32 to vector<256x128xf32>
    %29 = arith.cmpf ogt, %27, %28 : vector<256x128xf32>
    %cst_20 = arith.constant 2.000000e-01 : f32
    %30 = vector.broadcast %cst_20 : f32 to vector<256x128xf32>
    %31 = arith.mulf %30, %27 : vector<256x128xf32>
    %32 = arith.select %29, %27, %31 : vector<256x128xi1>, vector<256x128xf32>
    %33 = arith.truncf %32 : vector<256x128xf32> to vector<256x128xbf16>
    %c0_21 = arith.constant 0 : index
    %c0_22 = arith.constant 0 : index
    %34 = vector.load %arg8[%c0_21, %c0_22] : memref<128x128xbf16, #tpu.memory_space<vmem>>, vector<128x128xbf16>
    %cst_23 = arith.constant dense<0.000000e+00> : vector<256x128xf32>
    %35 = tpu.matmul %33, %34, %cst_23 {dimension_numbers = #tpu.dot_dimension_numbers<[1], [0], [0], [1], [0, 0, 1, 1], [], []>} : vector<256x128xbf16>, vector<128x128xbf16>, vector<256x128xf32> -> vector<256x128xf32>
    %c0_24 = arith.constant 0 : index
    %c0_25 = arith.constant 0 : index
    %36 = vector.load %arg9[%c0_24, %c0_25] : memref<1x128xf32, #tpu.memory_space<vmem>>, vector<1x128xf32>
    %37 = vector.broadcast %36 : vector<1x128xf32> to vector<256x128xf32>
    %38 = arith.addf %35, %37 : vector<256x128xf32>
    %cst_26 = arith.constant 0.000000e+00 : f32
    %39 = vector.broadcast %cst_26 : f32 to vector<256x128xf32>
    %40 = arith.subf %39, %38 : vector<256x128xf32>
    %41 = math.exp %40 : vector<256x128xf32>
    %cst_27 = arith.constant 1.000000e+00 : f32
    %42 = vector.broadcast %cst_27 : f32 to vector<256x128xf32>
    %43 = arith.addf %42, %41 : vector<256x128xf32>
    %44 = tpu.reciprocal %43 {approx = true} : vector<256x128xf32> -> vector<256x128xf32>
    %45 = vector.extract_strided_slice %44 {offsets = [0, 0], sizes = [256, 1], strides = [1, 1]} : vector<256x128xf32> to vector<256x1xf32>
    %c0_28 = arith.constant 0 : index
    %c0_29 = arith.constant 0 : index
    %46 = vector.load %arg10[%c0_28, %c0_29] : memref<256x1xf32, #tpu.memory_space<vmem>>, vector<256x1xf32>
    tpu.vector_store %arg10[%c0_28, %c0_29], %45 {strides = array<i32>} : memref<256x1xf32, #tpu.memory_space<vmem>>, vector<256x1xf32>,
    return
  }
  func.func @transform_0(%arg0: i32) -> (i32, i32) {
    %c0_i32 = arith.constant 0 : i32
    %c0_i32_0 = arith.constant 0 : i32
    return %arg0, %c0_i32 : i32, i32
  }
  func.func @transform_1(%arg0: i32) -> (i32, i32) {
    %c0_i32 = arith.constant 0 : i32
    %c0_i32_0 = arith.constant 0 : i32
    %c0_i32_1 = arith.constant 0 : i32
    return %c0_i32, %c0_i32_0 : i32, i32
  }
  func.func @transform_2(%arg0: i32) -> (i32, i32) {
    %c0_i32 = arith.constant 0 : i32
    %c0_i32_0 = arith.constant 0 : i32
    %c0_i32_1 = arith.constant 0 : i32
    return %c0_i32, %c0_i32_0 : i32, i32
  }
  func.func @transform_3(%arg0: i32) -> (i32, i32) {
    %c0_i32 = arith.constant 0 : i32
    %c0_i32_0 = arith.constant 0 : i32
    %c0_i32_1 = arith.constant 0 : i32
    return %c0_i32, %c0_i32_0 : i32, i32
  }
  func.func @transform_4(%arg0: i32) -> (i32, i32) {
    %c0_i32 = arith.constant 0 : i32
    %c0_i32_0 = arith.constant 0 : i32
    %c0_i32_1 = arith.constant 0 : i32
    return %c0_i32, %c0_i32_0 : i32, i32
  }
  func.func @transform_5(%arg0: i32) -> (i32, i32) {
    %c0_i32 = arith.constant 0 : i32
    %c0_i32_0 = arith.constant 0 : i32
    %c0_i32_1 = arith.constant 0 : i32
    return %c0_i32, %c0_i32_0 : i32, i32
  }
  func.func @transform_6(%arg0: i32) -> (i32, i32) {
    %c0_i32 = arith.constant 0 : i32
    %c0_i32_0 = arith.constant 0 : i32
    %c0_i32_1 = arith.constant 0 : i32
    return %c0_i32, %c0_i32_0 : i32, i32
  }
  func.func @transform_7(%arg0: i32) -> (i32, i32) {
    %c0_i32 = arith.constant 0 : i32
    %c0_i32_0 = arith.constant 0 : i32
    %c0_i32_1 = arith.constant 0 : i32
    return %c0_i32, %c0_i32_0 : i32, i32
  }
  func.func @transform_8(%arg0: i32) -> (i32, i32) {
    %c0_i32 = arith.constant 0 : i32
    %c0_i32_0 = arith.constant 0 : i32
    %c0_i32_1 = arith.constant 0 : i32
    return %c0_i32, %c0_i32_0 : i32, i32
  }
  func.func @transform_9(%arg0: i32) -> (i32, i32) {
    %c0_i32 = arith.constant 0 : i32
    %c0_i32_0 = arith.constant 0 : i32
    return %arg0, %c0_i32 : i32, i32
  }
}

</mosaic_0001>

<bundles_post_ra>
// kernel: tpu_custom_call.1
= control target key start
LH: loop header
LB: loop body
LE: loop exit
PB: predicated region body
PF: predicated region fallthrough
CT: control target
= control target key end

     0   :  { %s2584_s30 = smov 0   ;;  %s2967_s0 = inlined_call_operand.vmem [shape: bf16[512,64], index: 0, kind: input, shape index: {}]   ;;  %s2968_s1 = inlined_call_operand.vmem [shape: bf16[64,128], index: 1, kind: input, shape index: {}]   ;;  %s2969_s2 = inlined_call_operand.vmem [shape: f32[1,128], index: 2, kind: input, shape index: {}]   ;;  %s2970_s3 = inlined_call_operand.vmem [shape: bf16[128,128], index: 3, kind: input, shape index: {}]   ;;  %s2971_s4 = inlined_call_operand.vmem [shape: f32[1,128], index: 4, kind: input, shape index: {}]   ;;  %s2972_s5 = inlined_call_operand.vmem [shape: bf16[128,128], index: 5, kind: input, shape index: {}]   ;;  %s2973_s6 = inlined_call_operand.vmem [shape: f32[1,128], index: 6, kind: input, shape index: {}]   ;;  %s2974_s7 = inlined_call_operand.vmem [shape: bf16[128,128], index: 7, kind: input, shape index: {}]   ;;  %s2975_s8 = inlined_call_operand.vmem [shape: f32[1,128], index: 8, kind: input, shape index: {}]   ;;  %s2976_s9 = inlined_call_operand.vmem [shape: f32[512,1], index: 9, kind: output, shape index: {}]  }
   0x1 LB: > { %s1979_s10 = sadd.s32 4294967295, %s2532_s30   ;;  %p1983_p0 = scmp.ge.s32.totalorder %s2532_s30, 1  ;;  %s2532_s30 = sphi %s2584_s30, %s19_s30  }
   0x2   : > { %p288_p1 = scmp.lt.s32.totalorder %s2532_s30, 3 }
   0x4   : > { %p289_p2 = pnand %p1983_p0, %p288_p1 }
   0x5   : > { %v2354_v0 = vld [vmem:[%s2968_s1] sm:$0xff] (!%p289_p2)   ;;  %s1984_s13 = sshll.u32 (!%p289_p2), %s1979_s10, 5  ;;  %v2355_v1 = vld [vmem:[%s2968_s1 + $0x8] sm:$0xff] (!%p289_p2)   ;;  %v2356_v2 = vld [vmem:[%s2968_s1 + $0x10] sm:$0xff] (!%p289_p2)   ;;  %vm488_vm0 = vcmask (!%p289_p2), 523264  }
   0x6   : > { %292 = sbr.rel (%p289_p2) target bundleno = 996 (0x3e4), region = 56  ;;  %p325_p3 = scmp.lt.s32.totalorder (!%p289_p2), %s1984_s13, 63  ;;  %2146 = vmatprep.subr.bf16.mxu0 (!%p289_p2), %v2354_v0  ;;  %v2374_v3 = vld [vmem:[%s2970_s3] sm:$0xff] (!%p289_p2)   ;;  %v2375_v4 = vld [vmem:[%s2970_s3 + $0x8] sm:$0xff] (!%p289_p2)   ;;  %v2357_v6 = vld [vmem:[%s2968_s1 + $0x18] sm:$0xff] (!%p289_p2)  }
   0x7   : > { %2147 = vmatpush3.bf16.msra.mxu0 (!%p289_p2), %v2354_v0  ;;  %2186 = vmatprep.subr.bf16.mxu1 (!%p289_p2), %v2374_v3  ;;  %v2376_v11 = vld [vmem:[%s2970_s3 + $0x10] sm:$0xff] (!%p289_p2)   ;;  %v2377_v12 = vld [vmem:[%s2970_s3 + $0x18] sm:$0xff] (!%p289_p2)   ;;  %v2378_v13 = vld [vmem:[%s2970_s3 + $0x20] sm:$0xff] (!%p289_p2)  }
   0x8   : > { %2148 = vmatprep.subr.bf16.mxu0 (!%p289_p2), %v2355_v1  ;;  %2187 = vmatpush3.bf16.msra.mxu1 (!%p289_p2), %v2374_v3  ;;  %v2379_v25 = vld [vmem:[%s2970_s3 + $0x28] sm:$0xff] (!%p289_p2)   ;;  %v2380_v26 = vld [vmem:[%s2970_s3 + $0x30] sm:$0xff] (!%p289_p2)   ;;  %v2381_v27 = vld [vmem:[%s2970_s3 + $0x38] sm:$0xff] (!%p289_p2)  }
   0x9   : > { %2188 = vmatprep.subr.bf16.mxu1 (!%p289_p2), %v2375_v4  ;;  %v2382_v28 = vld [vmem:[%s2972_s5] sm:$0xff] (!%p289_p2)   ;;  %v2383_v29 = vld [vmem:[%s2972_s5 + $0x8] sm:$0xff] (!%p289_p2)   ;;  %v2384_v30 = vld [vmem:[%s2972_s5 + $0x10] sm:$0xff] (!%p289_p2)  }
   0xa   : > { %v2385_v31 = vld [vmem:[%s2972_s5 + $0x18] sm:$0xff] (!%p289_p2)   ;;  %v2386_v32 = vld [vmem:[%s2972_s5 + $0x20] sm:$0xff] (!%p289_p2)   ;;  %v2387_v33 = vld [vmem:[%s2972_s5 + $0x28] sm:$0xff] (!%p289_p2)  }
   0xb   : > { %2149 = vmatpush3.bf16.msra.mxu0 (!%p289_p2), %v2355_v1  ;;  %v2388_v34 = vld [vmem:[%s2972_s5 + $0x30] sm:$0xff] (!%p289_p2)   ;;  %v2692_v35 = vld [vmem:[%s2969_s2] ss:$0 sm:$0xff] (!%p289_p2) }
   0xc   : > { %2150 = vmatprep.subr.bf16.mxu0 (!%p289_p2), %v2356_v2  ;;  %2189 = vmatpush3.bf16.msra.mxu1 (!%p289_p2), %v2375_v4 }
   0xd   : > { %s2978_s13 = smov (!%p325_p3, %s1984_s13), 63  ;;  %2190 = vmatprep.subr.bf16.mxu1 %v2376_v11 }
   0xe   : > { %s1985_s20 = sshll.u32 %s2978_s13, 2 }
   0xf   : > { %s2610_s23 = scalar_lea.vmem %s2967_s0, %s1985_s20  ;;  %2151 = vmatpush3.bf16.msra.mxu0 %v2356_v2 }
  0x10   : > { %v2358_v5 = vld [vmem:[%s2610_s23] sm:$0xff]   ;;  %2152 = vmatprep.subr.bf16.mxu0 %v2357_v6  ;;  %v2359_v7 = vld [vmem:[%s2610_s23 + $0x8] sm:$0xff]   ;;  %v2360_v8 = vld [vmem:[%s2610_s23 + $0x10] sm:$0xff]   ;;  %2191 = vmatpush3.bf16.msra.mxu1 %v2376_v11 }
  0x11   : > { %2154 = vmatprep.mubr.msk.bf16.mxu0 %vm488_vm0, %v2358_v5  ;;  %v2361_v9 = vld [vmem:[%s2610_s23 + $0x18] sm:$0xff]   ;;  %v2362_v10 = vld [vmem:[%s2610_s23 + $0x20] sm:$0xff]   ;;  %2192 = vmatprep.subr.bf16.mxu1 %v2377_v12  ;;  %v2363_v14 = vld [vmem:[%s2610_s23 + $0x28] sm:$0xff]  }
  0x12   : > { %v2364_v15 = vld [vmem:[%s2610_s23 + $0x30] sm:$0xff]   ;;  %v2365_v16 = vld [vmem:[%s2610_s23 + $0x38] sm:$0xff]   ;;  %v2366_v17 = vld [vmem:[%s2610_s23 + $0x40] sm:$0xff]  }
  0x13   : > { %2153 = vmatpush3.bf16.msra.mxu0 %v2357_v6  ;;  %v2367_v18 = vld [vmem:[%s2610_s23 + $0x48] sm:$0xff]   ;;  %v2368_v19 = vld [vmem:[%s2610_s23 + $0x50] sm:$0xff]   ;;  %v2369_v20 = vld [vmem:[%s2610_s23 + $0x58] sm:$0xff]  }
  0x14   : > { %2193 = vmatpush3.bf16.msra.mxu1 %v2377_v12  ;;  %v2370_v21 = vld [vmem:[%s2610_s23 + $0x60] sm:$0xff]   ;;  %v2371_v22 = vld [vmem:[%s2610_s23 + $0x68] sm:$0xff]   ;;  %v2372_v23 = vld [vmem:[%s2610_s23 + $0x70] sm:$0xff]   ;;  %2234 = vmatprep.subr.bf16.mxu0 %v2382_v28 }
  0x15   : > { %2194 = vmatprep.subr.bf16.mxu1 %v2378_v13  ;;  %v2373_v24 = vld [vmem:[%s2610_s23 + $0x78] sm:$0xff]   ;;  %s1987_s23 = sshll.u32 %s2978_s13, 3 }
  0x16   : > { %2155 = vmatmul.mubr.msk.bf16.vlgmr.msra.gmra.mrb[0].mxu0 %vm488_vm0, %v2359_v7  ;;  %s2881_s25 = scalar_lea.vmem %s2976_s9, %s1987_s23 }
  0x17   : > { %2158 = vmatprep.mubr.msk.bf16.mxu0 %vm488_vm0, %v2360_v8  ;;  %2235 = vmatpush3.bf16.msra.mxu0 %v2382_v28 }
  0x18   : > { %2195 = vmatpush3.bf16.msra.mxu1 %v2378_v13  ;;  %2236 = vmatprep.subr.bf16.mxu0 %v2383_v29 }
  0x19   : > { %2196 = vmatprep.subr.bf16.mxu1 %v2379_v25 }
  0x1b   : > { %2237 = vmatpush3.bf16.msra.mxu0 %v2383_v29 }
  0x1c   : > { %2197 = vmatpush3.bf16.msra.mxu1 %v2379_v25  ;;  %2238 = vmatprep.subr.bf16.mxu0 %v2384_v30 }
  0x1d   : > { %2198 = vmatprep.subr.bf16.mxu1 %v2380_v26 }
  0x1e   : > { %2159 = vmatmul.mubr.msk.bf16.gmra.mrb[4].mxu0 %vm488_vm0, %v2361_v9 }
  0x1f   : > { %2162 = vmatprep.mubr.msk.bf16.mxu0 %vm488_vm0, %v2362_v10  ;;  %2239 = vmatpush3.bf16.msra.mxu0 %v2384_v30 }
  0x20   : > { %2199 = vmatpush3.bf16.msra.mxu1 %v2380_v26  ;;  %2240 = vmatprep.subr.bf16.mxu0 %v2385_v31 }
  0x21   : > { %2200 = vmatprep.subr.bf16.mxu1 %v2381_v27 }
  0x23   : > { %2241 = vmatpush3.bf16.msra.mxu0 %v2385_v31 }
  0x24   : > { %2201 = vmatpush3.bf16.msra.mxu1 %v2381_v27  ;;  %2242 = vmatprep.subr.bf16.mxu0 %v2386_v32 }
  0x26   : > { %2163 = vmatmul.mubr.msk.bf16.gmra.mrb[8].mxu0 %vm488_vm0, %v2363_v14 }
  0x27   : > { %2166 = vmatprep.mubr.msk.bf16.mxu0 %vm488_vm0, %v2364_v15  ;;  %2243 = vmatpush3.bf16.msra.mxu0 %v2386_v32 }
  0x28   : > { %2244 = vmatprep.subr.bf16.mxu0 %v2387_v33 }
  0x2b   : > { %2245 = vmatpush3.bf16.msra.mxu0 %v2387_v33 }
  0x2c   : > { %2246 = vmatprep.subr.bf16.mxu0 %v2388_v34 }
  0x2e   : > { %2167 = vmatmul.mubr.msk.bf16.gmra.mrb[12].mxu0 %vm488_vm0, %v2365_v16 }
  0x2f   : > { %2170 = vmatprep.mubr.msk.bf16.mxu0 %vm488_vm0, %v2366_v17  ;;  %2247 = vmatpush3.bf16.msra.mxu0 %v2388_v34 }
  0x36   : > { %2171 = vmatmul.mubr.msk.bf16.gmra.mrb[16].mxu0 %vm488_vm0, %v2367_v18 }
  0x37   : > { %2174 = vmatprep.mubr.msk.bf16.mxu0 %vm488_vm0, %v2368_v19 }
  0x3e   : > { %2175 = vmatmul.mubr.msk.bf16.gmra.mrb[20].mxu0 %vm488_vm0, %v2369_v20 }
  0x3f   : > { %2178 = vmatprep.mubr.msk.bf16.mxu0 %vm488_vm0, %v2370_v21 }
  0x46   : > { %2179 = vmatmul.mubr.msk.bf16.gmra.mrb[24].mxu0 %vm488_vm0, %v2371_v22 }
  0x47   : > { %2182 = vmatprep.mubr.msk.bf16.mxu0 %vm488_vm0, %v2372_v23 }
  0x4e   : > { %2183 = vmatmul.mubr.msk.bf16.gmra.mrb[28].mxu0 %vm488_vm0, %v2373_v24 }
  0xe9   : > { %v2156_v36 = vpop.f32.mrb[0].mxu0 }
  0xea   : > { %v580_v37 = vadd.f32 %v2156_v36, %v2692_v35  ;;  %v571_v38 = vpop.f32.mrb[1].mxu0 }
  0xeb   : > { %v572_v39 = vadd.f32 %v2692_v35, %v571_v38  ;;  %v2157_v40 = vpop.f32.mrb[2].mxu0 }
  0xec   : > { %v732_v41 = vmul.f32 0.2, %v580_v37  ;;  %v583_v42 = vadd.f32 %v2157_v40, %v2692_v35  ;;  %v574_v43 = vpop.f32.mrb[3].mxu0  ;;  %vm700_vm1 = vcmp.gt.f32.partialorder %v580_v37, 0.0 }
  0xed   : > { %v730_v44 = vmul.f32 0.2, %v572_v39  ;;  %v575_v45 = vadd.f32 %v2692_v35, %v574_v43  ;;  %vm698_vm3 = vcmp.gt.f32.partialorder %v572_v39, 0.0 }
  0xee   : > { %vm701_vm2 = vcmp.gt.f32.partialorder %v583_v42, 0.0  ;;  %v733_v46 = vmul.f32 0.2, %v583_v42  ;;  %v764_v48 = vsel %vm700_vm1, %v580_v37, %v732_v41 }
  0xef   : > { %v731_v47 = vmul.f32 0.2, %v575_v45  ;;  %vm699_vm4 = vcmp.gt.f32.partialorder %v575_v45, 0.0  ;;  %v762_v51 = vsel %vm698_vm3, %v572_v39, %v730_v44 }
  0xf0   : > { %v765_v49 = vsel %vm701_vm2, %v583_v42, %v733_v46 }
  0xf1   : > { %v2160_v50 = vpop.f32.mrb[4].mxu0  ;;  %v763_v52 = vsel %vm699_vm4, %v575_v45, %v731_v47  ;;  %v795_v53 = vpack.c.bf16 %v765_v49, %v764_v48 }
  0xf2   : > { %v596_v54 = vadd.f32 %v2160_v50, %v2692_v35  ;;  %v587_v55 = vpop.f32.mrb[5].mxu0  ;;  %v794_v56 = vpack.c.bf16 %v763_v52, %v762_v51 }
  0xf3   : > { %v588_v57 = vadd.f32 %v2692_v35, %v587_v55  ;;  %v2161_v58 = vpop.f32.mrb[6].mxu0 }
  0xf4   : > { %v736_v59 = vmul.f32 0.2, %v596_v54  ;;  %v599_v60 = vadd.f32 %v2161_v58, %v2692_v35  ;;  %v590_v61 = vpop.f32.mrb[7].mxu0  ;;  %2202 = vmatprep.mubr.bf16.mxu1 %v794_v56  ;;  %vm704_vm5 = vcmp.gt.f32.partialorder %v596_v54, 0.0 }
  0xf5   : > { %v734_v62 = vmul.f32 0.2, %v588_v57  ;;  %v591_v63 = vadd.f32 %v2692_v35, %v590_v61  ;;  %2203 = vmatmul.mubr.bf16.vlgmr.msra.gmra.mrb[0].mxu1 %v795_v53  ;;  %vm702_vm6 = vcmp.gt.f32.partialorder %v588_v57, 0.0 }
  0xf6   : > { %vm705_vm7 = vcmp.gt.f32.partialorder %v599_v60, 0.0  ;;  %v737_v0 = vmul.f32 0.2, %v599_v60  ;;  %v768_v2 = vsel %vm704_vm5, %v596_v54, %v736_v59 }
  0xf7   : > { %vm703_vm8 = vcmp.gt.f32.partialorder %v591_v63, 0.0  ;;  %v735_v1 = vmul.f32 0.2, %v591_v63  ;;  %v766_v5 = vsel %vm702_vm6, %v588_v57, %v734_v62 }
  0xf8   : > { %v769_v3 = vsel %vm705_vm7, %v599_v60, %v737_v0 }
  0xf9   : > { %v2164_v4 = vpop.f32.mrb[8].mxu0  ;;  %v767_v6 = vsel %vm703_vm8, %v591_v63, %v735_v1  ;;  %v797_v7 = vpack.c.bf16 %v769_v3, %v768_v2 }
  0xfa   : > { %v612_v8 = vadd.f32 %v2164_v4, %v2692_v35  ;;  %v603_v9 = vpop.f32.mrb[9].mxu0  ;;  %v796_v10 = vpack.c.bf16 %v767_v6, %v766_v5 }
  0xfb   : > { %v604_v11 = vadd.f32 %v2692_v35, %v603_v9  ;;  %v2165_v12 = vpop.f32.mrb[10].mxu0 }
  0xfc   : > { %v740_v13 = vmul.f32 0.2, %v612_v8  ;;  %v615_v14 = vadd.f32 %v2165_v12, %v2692_v35  ;;  %v606_v15 = vpop.f32.mrb[11].mxu0  ;;  %2206 = vmatprep.mubr.bf16.mxu1 %v796_v10  ;;  %vm708_vm9 = vcmp.gt.f32.partialorder %v612_v8, 0.0 }
  0xfd   : > { %v738_v16 = vmul.f32 0.2, %v604_v11  ;;  %v607_v17 = vadd.f32 %v2692_v35, %v606_v15  ;;  %2207 = vmatmul.mubr.bf16.gmra.mrb[4].mxu1 %v797_v7  ;;  %vm706_vm10 = vcmp.gt.f32.partialorder %v604_v11, 0.0 }
  0xfe   : > { %vm709_vm11 = vcmp.gt.f32.partialorder %v615_v14, 0.0  ;;  %v741_v18 = vmul.f32 0.2, %v615_v14  ;;  %v772_v20 = vsel %vm708_vm9, %v612_v8, %v740_v13 }
  0xff   : > { %vm707_vm12 = vcmp.gt.f32.partialorder %v607_v17, 0.0  ;;  %v739_v19 = vmul.f32 0.2, %v607_v17  ;;  %v770_v23 = vsel %vm706_vm10, %v604_v11, %v738_v16 }
 0x100   : > { %v773_v21 = vsel %vm709_vm11, %v615_v14, %v741_v18 }
 0x101   : > { %v2168_v22 = vpop.f32.mrb[12].mxu0  ;;  %v771_v24 = vsel %vm707_vm12, %v607_v17, %v739_v19  ;;  %v799_v25 = vpack.c.bf16 %v773_v21, %v772_v20 }
 0x102   : > { %v628_v26 = vadd.f32 %v2168_v22, %v2692_v35  ;;  %v619_v27 = vpop.f32.mrb[13].mxu0  ;;  %v798_v28 = vpack.c.bf16 %v771_v24, %v770_v23 }
 0x103   : > { %v620_v29 = vadd.f32 %v2692_v35, %v619_v27  ;;  %v2169_v30 = vpop.f32.mrb[14].mxu0 }
 0x104   : > { %v744_v31 = vmul.f32 0.2, %v628_v26  ;;  %v631_v32 = vadd.f32 %v2169_v30, %v2692_v35  ;;  %v622_v33 = vpop.f32.mrb[15].mxu0  ;;  %2210 = vmatprep.mubr.bf16.mxu1 %v798_v28  ;;  %vm712_vm13 = vcmp.gt.f32.partialorder %v628_v26, 0.0 }
 0x105   : > { %v742_v34 = vmul.f32 0.2, %v620_v29  ;;  %v623_v36 = vadd.f32 %v2692_v35, %v622_v33  ;;  %2211 = vmatmul.mubr.bf16.gmra.mrb[8].mxu1 %v799_v25  ;;  %vm710_vm14 = vcmp.gt.f32.partialorder %v620_v29, 0.0 }
 0x106   : > { %vm713_vm15 = vcmp.gt.f32.partialorder %v631_v32, 0.0  ;;  %v745_v37 = vmul.f32 0.2, %v631_v32  ;;  %v776_v39 = vsel %vm712_vm13, %v628_v26, %v744_v31 }
 0x107   : > { %vm711_vm0 = vcmp.gt.f32.partialorder %v623_v36, 0.0  ;;  %v743_v38 = vmul.f32 0.2, %v623_v36  ;;  %v774_v42 = vsel %vm710_vm14, %v620_v29, %v742_v34 }
 0x108   : > { %v777_v40 = vsel %vm713_vm15, %v631_v32, %v745_v37 }
 0x109   : > { %v2172_v41 = vpop.f32.mrb[16].mxu0  ;;  %v775_v43 = vsel %vm711_vm0, %v623_v36, %v743_v38  ;;  %v801_v44 = vpack.c.bf16 %v777_v40, %v776_v39 }
 0x10a   : > { %v644_v45 = vadd.f32 %v2172_v41, %v2692_v35  ;;  %v635_v46 = vpop.f32.mrb[17].mxu0  ;;  %v800_v47 = vpack.c.bf16 %v775_v43, %v774_v42 }
 0x10b   : > { %v636_v48 = vadd.f32 %v2692_v35, %v635_v46  ;;  %v2173_v49 = vpop.f32.mrb[18].mxu0 }
 0x10c   : > { %v748_v50 = vmul.f32 0.2, %v644_v45  ;;  %v647_v51 = vadd.f32 %v2173_v49, %v2692_v35  ;;  %v638_v52 = vpop.f32.mrb[19].mxu0  ;;  %2214 = vmatprep.mubr.bf16.mxu1 %v800_v47  ;;  %vm716_vm1 = vcmp.gt.f32.partialorder %v644_v45, 0.0 }
 0x10d   : > { %v746_v53 = vmul.f32 0.2, %v636_v48  ;;  %v639_v54 = vadd.f32 %v2692_v35, %v638_v52  ;;  %2215 = vmatmul.mubr.bf16.gmra.mrb[12].mxu1 %v801_v44  ;;  %vm714_vm2 = vcmp.gt.f32.partialorder %v636_v48, 0.0 }
 0x10e   : > { %vm717_vm3 = vcmp.gt.f32.partialorder %v647_v51, 0.0  ;;  %v749_v55 = vmul.f32 0.2, %v647_v51  ;;  %v780_v57 = vsel %vm716_vm1, %v644_v45, %v748_v50 }
 0x10f   : > { %vm715_vm4 = vcmp.gt.f32.partialorder %v639_v54, 0.0  ;;  %v747_v56 = vmul.f32 0.2, %v639_v54  ;;  %v778_v60 = vsel %vm714_vm2, %v636_v48, %v746_v53 }
 0x110   : > { %v781_v58 = vsel %vm717_vm3, %v647_v51, %v749_v55  ;;  %v2735_v55 = vld [vmem:[%s2974_s7 + $0x8] sm:$0xff]  }
 0x111   : > { %v2176_v59 = vpop.f32.mrb[20].mxu0  ;;  %v779_v61 = vsel %vm715_vm4, %v639_v54, %v747_v56  ;;  %v803_v62 = vpack.c.bf16 %v781_v58, %v780_v57  ;;  %v2389_v54 = vld [vmem:[%s2972_s5 + $0x38] sm:$0xff]   ;;  %v2741_v56 = vld [vmem:[%s2974_s7 + $0x10] sm:$0xff]   ;;  %v2755_v58 = vld [vmem:[%s2974_s7 + $0x20] sm:$0xff]  }
 0x112   : > { %v660_v63 = vadd.f32 %v2176_v59, %v2692_v35  ;;  %v651_v0 = vpop.f32.mrb[21].mxu0  ;;  %v802_v1 = vpack.c.bf16 %v779_v61, %v778_v60  ;;  %2248 = vmatprep.subr.bf16.mxu0 %v2389_v54  ;;  %v2748_v57 = vld [vmem:[%s2974_s7 + $0x18] sm:$0xff]   ;;  %v2762_v59 = vld [vmem:[%s2974_s7 + $0x28] sm:$0xff]   ;;  %v2770_v60 = vld [vmem:[%s2971_s4] ss:$0 sm:$0xff] }
 0x113   : > { %v652_v2 = vadd.f32 %v2692_v35, %v651_v0  ;;  %v2177_v3 = vpop.f32.mrb[22].mxu0  ;;  %2249 = vmatpush3.bf16.msra.mxu0 %v2389_v54 }
 0x114   : > { %v752_v4 = vmul.f32 0.2, %v660_v63  ;;  %v663_v5 = vadd.f32 %v2177_v3, %v2692_v35  ;;  %v654_v6 = vpop.f32.mrb[23].mxu0  ;;  %2218 = vmatprep.mubr.bf16.mxu1 %v802_v1  ;;  %vm720_vm5 = vcmp.gt.f32.partialorder %v660_v63, 0.0 }
 0x115   : > { %v750_v7 = vmul.f32 0.2, %v652_v2  ;;  %v655_v8 = vadd.f32 %v2692_v35, %v654_v6  ;;  %2219 = vmatmul.mubr.bf16.gmra.mrb[16].mxu1 %v803_v62  ;;  %vm718_vm6 = vcmp.gt.f32.partialorder %v652_v2, 0.0 }
 0x116   : > { %vm721_vm7 = vcmp.gt.f32.partialorder %v663_v5, 0.0  ;;  %v753_v9 = vmul.f32 0.2, %v663_v5  ;;  %v784_v11 = vsel %vm720_vm5, %v660_v63, %v752_v4 }
 0x117   : > { %vm719_vm8 = vcmp.gt.f32.partialorder %v655_v8, 0.0  ;;  %v751_v10 = vmul.f32 0.2, %v655_v8  ;;  %v782_v14 = vsel %vm718_vm6, %v652_v2, %v750_v7 }
 0x118   : > { %v785_v12 = vsel %vm721_vm7, %v663_v5, %v753_v9 }
 0x119   : > { %v2180_v13 = vpop.f32.mrb[24].mxu0  ;;  %v783_v15 = vsel %vm719_vm8, %v655_v8, %v751_v10  ;;  %v805_v16 = vpack.c.bf16 %v785_v12, %v784_v11 }
 0x11a   : > { %v676_v17 = vadd.f32 %v2180_v13, %v2692_v35  ;;  %v667_v18 = vpop.f32.mrb[25].mxu0  ;;  %v804_v19 = vpack.c.bf16 %v783_v15, %v782_v14 }
 0x11b   : > { %v668_v20 = vadd.f32 %v2692_v35, %v667_v18  ;;  %v2181_v21 = vpop.f32.mrb[26].mxu0 }
 0x11c   : > { %v756_v22 = vmul.f32 0.2, %v676_v17  ;;  %v679_v23 = vadd.f32 %v2181_v21, %v2692_v35  ;;  %v670_v24 = vpop.f32.mrb[27].mxu0  ;;  %2222 = vmatprep.mubr.bf16.mxu1 %v804_v19  ;;  %vm724_vm9 = vcmp.gt.f32.partialorder %v676_v17, 0.0 }
 0x11d   : > { %v754_v25 = vmul.f32 0.2, %v668_v20  ;;  %v671_v26 = vadd.f32 %v2692_v35, %v670_v24  ;;  %2223 = vmatmul.mubr.bf16.gmra.mrb[20].mxu1 %v805_v16  ;;  %vm722_vm10 = vcmp.gt.f32.partialorder %v668_v20, 0.0 }
 0x11e   : > { %vm725_vm11 = vcmp.gt.f32.partialorder %v679_v23, 0.0  ;;  %v757_v27 = vmul.f32 0.2, %v679_v23  ;;  %v788_v29 = vsel %vm724_vm9, %v676_v17, %v756_v22 }
 0x11f   : > { %vm723_vm12 = vcmp.gt.f32.partialorder %v671_v26, 0.0  ;;  %v755_v28 = vmul.f32 0.2, %v671_v26  ;;  %v786_v32 = vsel %vm722_vm10, %v668_v20, %v754_v25 }
 0x120   : > { %v789_v30 = vsel %vm725_vm11, %v679_v23, %v757_v27 }
 0x121   : > { %v2184_v31 = vpop.f32.mrb[28].mxu0  ;;  %v787_v33 = vsel %vm723_vm12, %v671_v26, %v755_v28  ;;  %v807_v34 = vpack.c.bf16 %v789_v30, %v788_v29 }
 0x122   : > { %v692_v36 = vadd.f32 %v2184_v31, %v2692_v35  ;;  %v683_v37 = vpop.f32.mrb[29].mxu0  ;;  %v806_v38 = vpack.c.bf16 %v787_v33, %v786_v32 }
 0x123   : > { %v684_v39 = vadd.f32 %v2692_v35, %v683_v37  ;;  %v2185_v40 = vpop.f32.mrb[30].mxu0 }
 0x124   : > { %v760_v41 = vmul.f32 0.2, %v692_v36  ;;  %v695_v42 = vadd.f32 %v2185_v40, %v2692_v35  ;;  %v686_v43 = vpop.f32.mrb[31].mxu0  ;;  %2226 = vmatprep.mubr.bf16.mxu1 %v806_v38  ;;  %vm728_vm13 = vcmp.gt.f32.partialorder %v692_v36, 0.0 }
 0x125   : > { %v758_v44 = vmul.f32 0.2, %v684_v39  ;;  %v687_v45 = vadd.f32 %v2692_v35, %v686_v43  ;;  %2227 = vmatmul.mubr.bf16.gmra.mrb[24].mxu1 %v807_v34  ;;  %vm726_vm14 = vcmp.gt.f32.partialorder %v684_v39, 0.0  ;;  %v2390_v35 = vld [vmem:[%s2974_s7] sm:$0xff]  }
 0x126   : > { %vm729_vm15 = vcmp.gt.f32.partialorder %v695_v42, 0.0  ;;  %v761_v46 = vmul.f32 0.2, %v695_v42  ;;  %v792_v48 = vsel %vm728_vm13, %v692_v36, %v760_v41  ;;  %2330 = vmatprep.subr.bf16.mxu1 %v2390_v35  ;;  %2282 = vmatprep.subr.bf16.mxu0 %v2390_v35 }
 0x127   : > { %vm727_vm0 = vcmp.gt.f32.partialorder %v687_v45, 0.0  ;;  %v759_v47 = vmul.f32 0.2, %v687_v45  ;;  %v790_v50 = vsel %vm726_vm14, %v684_v39, %v758_v44  ;;  %2338 = vmatpush3.bf16.msra.mxu1 %v2390_v35 }
 0x128   : > { %v793_v49 = vsel %vm729_vm15, %v695_v42, %v761_v46  ;;  %2331 = vmatprep.subr.bf16.mxu1 %v2735_v55 }
 0x129   : > { %v791_v51 = vsel %vm727_vm0, %v687_v45, %v759_v47  ;;  %v809_v52 = vpack.c.bf16 %v793_v49, %v792_v48 }
 0x12a   : > { %v808_v53 = vpack.c.bf16 %v791_v51, %v790_v50 }
 0x12b   : > { %2339 = vmatpush3.bf16.msra.mxu1 %v2735_v55 }
 0x12c   : > { %2230 = vmatprep.mubr.bf16.mxu1 %v808_v53  ;;  %2332 = vmatprep.subr.bf16.mxu1 %v2741_v56 }
 0x12d   : > { %2231 = vmatmul.mubr.bf16.gmra.mrb[28].mxu1 %v809_v52 }
 0x12f   : > { %2340 = vmatpush3.bf16.msra.mxu1 %v2741_v56 }
 0x130   : > { %2333 = vmatprep.subr.bf16.mxu1 %v2748_v57 }
 0x133   : > { %2341 = vmatpush3.bf16.msra.mxu1 %v2748_v57 }
 0x134   : > { %2334 = vmatprep.subr.bf16.mxu1 %v2755_v58 }
 0x137   : > { %2342 = vmatpush3.bf16.msra.mxu1 %v2755_v58 }
 0x138   : > { %2335 = vmatprep.subr.bf16.mxu1 %v2762_v59 }
 0x13b   : > { %2343 = vmatpush3.bf16.msra.mxu1 %v2762_v59 }
 0x1c8   : > { %v2204_v61 = vpop.f32.mrb[0].mxu1 }
 0x1c9   : > { %v924_v62 = vadd.f32 %v2204_v61, %v2770_v60  ;;  %v915_v63 = vpop.f32.mrb[1].mxu1 }
 0x1ca   : > { %v916_v0 = vadd.f32 %v2770_v60, %v915_v63  ;;  %v2205_v1 = vpop.f32.mrb[2].mxu1 }
 0x1cb   : > { %v1076_v2 = vmul.f32 0.2, %v924_v62  ;;  %v927_v3 = vadd.f32 %v2205_v1, %v2770_v60  ;;  %v918_v4 = vpop.f32.mrb[3].mxu1  ;;  %vm1044_vm1 = vcmp.gt.f32.partialorder %v924_v62, 0.0 }
 0x1cc   : > { %v1074_v5 = vmul.f32 0.2, %v916_v0  ;;  %v919_v6 = vadd.f32 %v2770_v60, %v918_v4  ;;  %vm1042_vm2 = vcmp.gt.f32.partialorder %v916_v0, 0.0 }
 0x1cd   : > { %vm1045_vm3 = vcmp.gt.f32.partialorder %v927_v3, 0.0  ;;  %v1077_v7 = vmul.f32 0.2, %v927_v3  ;;  %v1108_v9 = vsel %vm1044_vm1, %v924_v62, %v1076_v2 }
 0x1ce   : > { %vm1043_vm4 = vcmp.gt.f32.partialorder %v919_v6, 0.0  ;;  %v1075_v8 = vmul.f32 0.2, %v919_v6  ;;  %v1106_v13 = vsel %vm1042_vm2, %v916_v0, %v1074_v5 }
 0x1cf   : > { %v1109_v10 = vsel %vm1045_vm3, %v927_v3, %v1077_v7 }
 0x1d0   : > { %v1139_v11 = vpack.c.bf16 %v1109_v10, %v1108_v9  ;;  %v2208_v12 = vpop.f32.mrb[4].mxu1  ;;  %v1107_v14 = vsel %vm1043_vm4, %v919_v6, %v1075_v8 }
 0x1d1   : > { %v940_v15 = vadd.f32 %v2208_v12, %v2770_v60  ;;  %v931_v16 = vpop.f32.mrb[5].mxu1  ;;  %v1138_v17 = vpack.c.bf16 %v1107_v14, %v1106_v13 }
 0x1d2   : > { %v932_v18 = vadd.f32 %v2770_v60, %v931_v16  ;;  %v2209_v19 = vpop.f32.mrb[6].mxu1 }
 0x1d3   : > { %v1080_v20 = vmul.f32 0.2, %v940_v15  ;;  %v943_v21 = vadd.f32 %v2209_v19, %v2770_v60  ;;  %v934_v22 = vpop.f32.mrb[7].mxu1  ;;  %2250 = vmatprep.mubr.bf16.mxu0 %v1138_v17  ;;  %vm1048_vm5 = vcmp.gt.f32.partialorder %v940_v15, 0.0 }
 0x1d4   : > { %v1078_v23 = vmul.f32 0.2, %v932_v18  ;;  %v935_v24 = vadd.f32 %v2770_v60, %v934_v22  ;;  %2251 = vmatmul.mubr.bf16.vlgmr.msra.gmra.mrb[32].mxu0 %v1139_v11  ;;  %vm1046_vm6 = vcmp.gt.f32.partialorder %v932_v18, 0.0 }
 0x1d5   : > { %vm1049_vm7 = vcmp.gt.f32.partialorder %v943_v21, 0.0  ;;  %v1081_v25 = vmul.f32 0.2, %v943_v21  ;;  %2283 = vmatpush3.bf16.msra.mxu0 %v2390_v35  ;;  %v1112_v27 = vsel %vm1048_vm5, %v940_v15, %v1080_v20 }
 0x1d6   : > { %vm1047_vm8 = vcmp.gt.f32.partialorder %v935_v24, 0.0  ;;  %v1079_v26 = vmul.f32 0.2, %v935_v24  ;;  %2284 = vmatprep.subr.bf16.mxu0 %v2735_v55  ;;  %v1110_v30 = vsel %vm1046_vm6, %v932_v18, %v1078_v23 }
 0x1d7   : > { %v1113_v28 = vsel %vm1049_vm7, %v943_v21, %v1081_v25 }
 0x1d8   : > { %v2212_v29 = vpop.f32.mrb[8].mxu1  ;;  %v1111_v31 = vsel %vm1047_vm8, %v935_v24, %v1079_v26  ;;  %v1141_v32 = vpack.c.bf16 %v1113_v28, %v1112_v27 }
 0x1d9   : > { %v956_v33 = vadd.f32 %v2212_v29, %v2770_v60  ;;  %v947_v34 = vpop.f32.mrb[9].mxu1  ;;  %v1140_v36 = vpack.c.bf16 %v1111_v31, %v1110_v30  ;;  %2285 = vmatpush3.bf16.msra.mxu0 %v2735_v55 }
 0x1da   : > { %v948_v37 = vadd.f32 %v2770_v60, %v947_v34  ;;  %v2213_v38 = vpop.f32.mrb[10].mxu1  ;;  %2286 = vmatprep.subr.bf16.mxu0 %v2741_v56 }
 0x1db   : > { %v1084_v39 = vmul.f32 0.2, %v956_v33  ;;  %v959_v40 = vadd.f32 %v2213_v38, %v2770_v60  ;;  %v950_v41 = vpop.f32.mrb[11].mxu1  ;;  %2254 = vmatprep.mubr.bf16.mxu0 %v1140_v36  ;;  %vm1052_vm9 = vcmp.gt.f32.partialorder %v956_v33, 0.0 }
 0x1dc   : > { %v1082_v42 = vmul.f32 0.2, %v948_v37  ;;  %v951_v43 = vadd.f32 %v2770_v60, %v950_v41  ;;  %2255 = vmatmul.mubr.bf16.gmra.mrb[36].mxu0 %v1141_v32  ;;  %vm1050_vm10 = vcmp.gt.f32.partialorder %v948_v37, 0.0 }
 0x1dd   : > { %vm1053_vm11 = vcmp.gt.f32.partialorder %v959_v40, 0.0  ;;  %v1085_v44 = vmul.f32 0.2, %v959_v40  ;;  %2287 = vmatpush3.bf16.msra.mxu0 %v2741_v56  ;;  %v1116_v46 = vsel %vm1052_vm9, %v956_v33, %v1084_v39 }
 0x1de   : > { %vm1051_vm12 = vcmp.gt.f32.partialorder %v951_v43, 0.0  ;;  %v1083_v45 = vmul.f32 0.2, %v951_v43  ;;  %2288 = vmatprep.subr.bf16.mxu0 %v2748_v57  ;;  %v1114_v49 = vsel %vm1050_vm10, %v948_v37, %v1082_v42 }
 0x1df   : > { %v1117_v47 = vsel %vm1053_vm11, %v959_v40, %v1085_v44 }
 0x1e0   : > { %v2216_v48 = vpop.f32.mrb[12].mxu1  ;;  %v1115_v50 = vsel %vm1051_vm12, %v951_v43, %v1083_v45  ;;  %v1143_v51 = vpack.c.bf16 %v1117_v47, %v1116_v46 }
 0x1e1   : > { %v972_v52 = vadd.f32 %v2216_v48, %v2770_v60  ;;  %v963_v53 = vpop.f32.mrb[13].mxu1  ;;  %v1142_v54 = vpack.c.bf16 %v1115_v50, %v1114_v49  ;;  %2289 = vmatpush3.bf16.msra.mxu0 %v2748_v57 }
 0x1e2   : > { %v964_v35 = vadd.f32 %v2770_v60, %v963_v53  ;;  %v2217_v55 = vpop.f32.mrb[14].mxu1  ;;  %2290 = vmatprep.subr.bf16.mxu0 %v2755_v58 }
 0x1e3   : > { %v1088_v56 = vmul.f32 0.2, %v972_v52  ;;  %v975_v61 = vadd.f32 %v2217_v55, %v2770_v60  ;;  %v966_v62 = vpop.f32.mrb[15].mxu1  ;;  %2258 = vmatprep.mubr.bf16.mxu0 %v1142_v54  ;;  %vm1056_vm13 = vcmp.gt.f32.partialorder %v972_v52, 0.0 }
 0x1e4   : > { %v1086_v63 = vmul.f32 0.2, %v964_v35  ;;  %v967_v0 = vadd.f32 %v2770_v60, %v966_v62  ;;  %2259 = vmatmul.mubr.bf16.gmra.mrb[40].mxu0 %v1143_v51  ;;  %vm1054_vm14 = vcmp.gt.f32.partialorder %v964_v35, 0.0 }
 0x1e5   : > { %vm1057_vm15 = vcmp.gt.f32.partialorder %v975_v61, 0.0  ;;  %v1089_v1 = vmul.f32 0.2, %v975_v61  ;;  %2291 = vmatpush3.bf16.msra.mxu0 %v2755_v58  ;;  %v1120_v2 = vsel %vm1056_vm13, %v972_v52, %v1088_v56 }
 0x1e6   : > { %vm1055_vm0 = vcmp.gt.f32.partialorder %v967_v0, 0.0  ;;  %v1087_v57 = vmul.f32 0.2, %v967_v0  ;;  %2292 = vmatprep.subr.bf16.mxu0 %v2762_v59  ;;  %v1118_v5 = vsel %vm1054_vm14, %v964_v35, %v1086_v63 }
 0x1e7   : > { %v1121_v3 = vsel %vm1057_vm15, %v975_v61, %v1089_v1 }
 0x1e8   : > { %v2220_v4 = vpop.f32.mrb[16].mxu1  ;;  %v1119_v6 = vsel %vm1055_vm0, %v967_v0, %v1087_v57  ;;  %v1145_v7 = vpack.c.bf16 %v1121_v3, %v1120_v2 }
 0x1e9   : > { %v988_v8 = vadd.f32 %v2220_v4, %v2770_v60  ;;  %v979_v9 = vpop.f32.mrb[17].mxu1  ;;  %v1144_v10 = vpack.c.bf16 %v1119_v6, %v1118_v5  ;;  %2293 = vmatpush3.bf16.msra.mxu0 %v2762_v59 }
 0x1ea   : > { %v980_v11 = vadd.f32 %v2770_v60, %v979_v9  ;;  %v2221_v12 = vpop.f32.mrb[18].mxu1 }
 0x1eb   : > { %v1092_v58 = vmul.f32 0.2, %v988_v8  ;;  %v991_v13 = vadd.f32 %v2221_v12, %v2770_v60  ;;  %v982_v14 = vpop.f32.mrb[19].mxu1  ;;  %2262 = vmatprep.mubr.bf16.mxu0 %v1144_v10  ;;  %vm1060_vm1 = vcmp.gt.f32.partialorder %v988_v8, 0.0 }
 0x1ec   : > { %v1090_v15 = vmul.f32 0.2, %v980_v11  ;;  %v983_v16 = vadd.f32 %v2770_v60, %v982_v14  ;;  %2263 = vmatmul.mubr.bf16.gmra.mrb[44].mxu0 %v1145_v7  ;;  %vm1058_vm2 = vcmp.gt.f32.partialorder %v980_v11, 0.0 }
 0x1ed   : > { %vm1061_vm3 = vcmp.gt.f32.partialorder %v991_v13, 0.0  ;;  %v1093_v17 = vmul.f32 0.2, %v991_v13  ;;  %v1124_v19 = vsel %vm1060_vm1, %v988_v8, %v1092_v58 }
 0x1ee   : > { %vm1059_vm4 = vcmp.gt.f32.partialorder %v983_v16, 0.0  ;;  %v1091_v18 = vmul.f32 0.2, %v983_v16  ;;  %v1122_v21 = vsel %vm1058_vm2, %v980_v11, %v1090_v15 }
 0x1ef   : > { %v1125_v59 = vsel %vm1061_vm3, %v991_v13, %v1093_v17  ;;  %v2823_v17 = vld [vmem:[%s2973_s6] ss:$0 sm:$0xff] }
 0x1f0   : > { %v2224_v20 = vpop.f32.mrb[20].mxu1  ;;  %v1123_v22 = vsel %vm1059_vm4, %v983_v16, %v1091_v18  ;;  %v1147_v23 = vpack.c.bf16 %v1125_v59, %v1124_v19  ;;  %v2396_v16 = vld [vmem:[%s2974_s7 + $0x30] sm:$0xff]  }
 0x1f1   : > { %v1004_v24 = vadd.f32 %v2224_v20, %v2770_v60  ;;  %v995_v25 = vpop.f32.mrb[21].mxu1  ;;  %v1146_v26 = vpack.c.bf16 %v1123_v22, %v1122_v21  ;;  %2336 = vmatprep.subr.bf16.mxu1 %v2396_v16  ;;  %2294 = vmatprep.subr.bf16.mxu0 %v2396_v16 }
 0x1f2   : > { %v996_v27 = vadd.f32 %v2770_v60, %v995_v25  ;;  %v2225_v28 = vpop.f32.mrb[22].mxu1  ;;  %2344 = vmatpush3.bf16.msra.mxu1 %v2396_v16  ;;  %2295 = vmatpush3.bf16.msra.mxu0 %v2396_v16 }
 0x1f3   : > { %v1096_v29 = vmul.f32 0.2, %v1004_v24  ;;  %v1007_v30 = vadd.f32 %v2225_v28, %v2770_v60  ;;  %v998_v31 = vpop.f32.mrb[23].mxu1  ;;  %2266 = vmatprep.mubr.bf16.mxu0 %v1146_v26  ;;  %vm1064_vm5 = vcmp.gt.f32.partialorder %v1004_v24, 0.0 }
 0x1f4   : > { %v1094_v32 = vmul.f32 0.2, %v996_v27  ;;  %v999_v33 = vadd.f32 %v2770_v60, %v998_v31  ;;  %2267 = vmatmul.mubr.bf16.gmra.mrb[48].mxu0 %v1147_v23  ;;  %vm1062_vm6 = vcmp.gt.f32.partialorder %v996_v27, 0.0 }
 0x1f5   : > { %vm1065_vm7 = vcmp.gt.f32.partialorder %v1007_v30, 0.0  ;;  %v1097_v34 = vmul.f32 0.2, %v1007_v30  ;;  %v1128_v37 = vsel %vm1064_vm5, %v1004_v24, %v1096_v29 }
 0x1f6   : > { %vm1063_vm8 = vcmp.gt.f32.partialorder %v999_v33, 0.0  ;;  %v1095_v36 = vmul.f32 0.2, %v999_v33  ;;  %v1126_v40 = vsel %vm1062_vm6, %v996_v27, %v1094_v32 }
 0x1f7   : > { %v1129_v38 = vsel %vm1065_vm7, %v1007_v30, %v1097_v34 }
 0x1f8   : > { %v2228_v39 = vpop.f32.mrb[24].mxu1  ;;  %v1127_v41 = vsel %vm1063_vm8, %v999_v33, %v1095_v36  ;;  %v1149_v42 = vpack.c.bf16 %v1129_v38, %v1128_v37 }
 0x1f9   : > { %v1020_v43 = vadd.f32 %v2228_v39, %v2770_v60  ;;  %v1011_v44 = vpop.f32.mrb[25].mxu1  ;;  %v1148_v45 = vpack.c.bf16 %v1127_v41, %v1126_v40 }
 0x1fa   : > { %v1012_v46 = vadd.f32 %v2770_v60, %v1011_v44  ;;  %v2229_v47 = vpop.f32.mrb[26].mxu1 }
 0x1fb   : > { %v1100_v48 = vmul.f32 0.2, %v1020_v43  ;;  %v1023_v49 = vadd.f32 %v2229_v47, %v2770_v60  ;;  %v1014_v50 = vpop.f32.mrb[27].mxu1  ;;  %2270 = vmatprep.mubr.bf16.mxu0 %v1148_v45  ;;  %vm1068_vm9 = vcmp.gt.f32.partialorder %v1020_v43, 0.0 }
 0x1fc   : > { %v1098_v51 = vmul.f32 0.2, %v1012_v46  ;;  %v1015_v52 = vadd.f32 %v2770_v60, %v1014_v50  ;;  %2271 = vmatmul.mubr.bf16.gmra.mrb[52].mxu0 %v1149_v42  ;;  %vm1066_vm10 = vcmp.gt.f32.partialorder %v1012_v46, 0.0 }
 0x1fd   : > { %vm1069_vm11 = vcmp.gt.f32.partialorder %v1023_v49, 0.0  ;;  %v1101_v53 = vmul.f32 0.2, %v1023_v49  ;;  %v1132_v35 = vsel %vm1068_vm9, %v1020_v43, %v1100_v48 }
 0x1fe   : > { %vm1067_vm12 = vcmp.gt.f32.partialorder %v1015_v52, 0.0  ;;  %v1099_v54 = vmul.f32 0.2, %v1015_v52  ;;  %v1130_v61 = vsel %vm1066_vm10, %v1012_v46, %v1098_v51 }
 0x1ff   : > { %v1133_v55 = vsel %vm1069_vm11, %v1023_v49, %v1101_v53 }
 0x200   : > { %v2232_v56 = vpop.f32.mrb[28].mxu1  ;;  %v1131_v62 = vsel %vm1067_vm12, %v1015_v52, %v1099_v54  ;;  %v1151_v63 = vpack.c.bf16 %v1133_v55, %v1132_v35 }
 0x201   : > { %v1036_v0 = vadd.f32 %v2232_v56, %v2770_v60  ;;  %v1027_v1 = vpop.f32.mrb[29].mxu1  ;;  %v1150_v57 = vpack.c.bf16 %v1131_v62, %v1130_v61 }
 0x202   : > { %v1028_v2 = vadd.f32 %v2770_v60, %v1027_v1  ;;  %v2233_v3 = vpop.f32.mrb[30].mxu1 }
 0x203   : > { %v1104_v4 = vmul.f32 0.2, %v1036_v0  ;;  %v1039_v5 = vadd.f32 %v2233_v3, %v2770_v60  ;;  %v1030_v6 = vpop.f32.mrb[31].mxu1  ;;  %2274 = vmatprep.mubr.bf16.mxu0 %v1150_v57  ;;  %vm1072_vm13 = vcmp.gt.f32.partialorder %v1036_v0, 0.0 }
 0x204   : > { %v1102_v7 = vmul.f32 0.2, %v1028_v2  ;;  %v1031_v8 = vadd.f32 %v2770_v60, %v1030_v6  ;;  %2275 = vmatmul.mubr.bf16.gmra.mrb[56].mxu0 %v1151_v63  ;;  %vm1070_vm14 = vcmp.gt.f32.partialorder %v1028_v2, 0.0  ;;  %v2397_v60 = vld [vmem:[%s2974_s7 + $0x38] sm:$0xff]  }
 0x205   : > { %vm1073_vm15 = vcmp.gt.f32.partialorder %v1039_v5, 0.0  ;;  %v1105_v9 = vmul.f32 0.2, %v1039_v5  ;;  %v1136_v11 = vsel %vm1072_vm13, %v1036_v0, %v1104_v4  ;;  %2296 = vmatprep.subr.bf16.mxu0 %v2397_v60  ;;  %2337 = vmatprep.subr.bf16.mxu1 %v2397_v60 }
 0x206   : > { %vm1071_vm0 = vcmp.gt.f32.partialorder %v1031_v8, 0.0  ;;  %v1103_v10 = vmul.f32 0.2, %v1031_v8  ;;  %v1134_v58 = vsel %vm1070_vm14, %v1028_v2, %v1102_v7  ;;  %2297 = vmatpush3.bf16.msra.mxu0 %v2397_v60  ;;  %2345 = vmatpush3.bf16.msra.mxu1 %v2397_v60 }
 0x207   : > { %v1137_v12 = vsel %vm1073_vm15, %v1039_v5, %v1105_v9 }
 0x208   : > { %v1135_v13 = vsel %vm1071_vm0, %v1031_v8, %v1103_v10  ;;  %v1153_v14 = vpack.c.bf16 %v1137_v12, %v1136_v11 }
 0x209   : > { %v1152_v15 = vpack.c.bf16 %v1135_v13, %v1134_v58 }
 0x20b   : > { %2278 = vmatprep.mubr.bf16.mxu0 %v1152_v15 }
 0x20c   : > { %2279 = vmatmul.mubr.bf16.gmra.mrb[60].mxu0 %v1153_v14 }
 0x2a7   : > { %v2252_v18 = vpop.f32.mrb[32].mxu0 }
 0x2a8   : > { %v1268_v19 = vadd.f32 %v2252_v18, %v2823_v17  ;;  %v1259_v59 = vpop.f32.mrb[33].mxu0 }
 0x2a9   : > { %v1260_v20 = vadd.f32 %v2823_v17, %v1259_v59  ;;  %v2253_v21 = vpop.f32.mrb[34].mxu0 }
 0x2aa   : > { %v1420_v22 = vmul.f32 0.2, %v1268_v19  ;;  %v1271_v23 = vadd.f32 %v2253_v21, %v2823_v17  ;;  %v1262_v24 = vpop.f32.mrb[35].mxu0  ;;  %vm1388_vm1 = vcmp.gt.f32.partialorder %v1268_v19, 0.0 }
 0x2ab   : > { %v1418_v25 = vmul.f32 0.2, %v1260_v20  ;;  %v1263_v26 = vadd.f32 %v2823_v17, %v1262_v24  ;;  %vm1386_vm2 = vcmp.gt.f32.partialorder %v1260_v20, 0.0 }
 0x2ac   : > { %vm1389_vm3 = vcmp.gt.f32.partialorder %v1271_v23, 0.0  ;;  %v1421_v27 = vmul.f32 0.2, %v1271_v23  ;;  %v1452_v29 = vsel %vm1388_vm1, %v1268_v19, %v1420_v22 }
 0x2ad   : > { %vm1387_vm4 = vcmp.gt.f32.partialorder %v1263_v26, 0.0  ;;  %v1419_v28 = vmul.f32 0.2, %v1263_v26  ;;  %v1450_v33 = vsel %vm1386_vm2, %v1260_v20, %v1418_v25 }
 0x2ae   : > { %v1453_v30 = vsel %vm1389_vm3, %v1271_v23, %v1421_v27 }
 0x2af   : > { %v1483_v31 = vpack.c.bf16 %v1453_v30, %v1452_v29  ;;  %v2256_v32 = vpop.f32.mrb[36].mxu0  ;;  %v1451_v34 = vsel %vm1387_vm4, %v1263_v26, %v1419_v28 }
 0x2b0   : > { %v1284_v36 = vadd.f32 %v2256_v32, %v2823_v17  ;;  %v1275_v37 = vpop.f32.mrb[37].mxu0  ;;  %v1482_v38 = vpack.c.bf16 %v1451_v34, %v1450_v33 }
 0x2b1   : > { %v1276_v39 = vadd.f32 %v2823_v17, %v1275_v37  ;;  %v2257_v40 = vpop.f32.mrb[38].mxu0 }
 0x2b2   : > { %v1424_v41 = vmul.f32 0.2, %v1284_v36  ;;  %v1287_v42 = vadd.f32 %v2257_v40, %v2823_v17  ;;  %v1278_v43 = vpop.f32.mrb[39].mxu0  ;;  %2298 = vmatprep.mubr.bf16.mxu0 %v1482_v38  ;;  %vm1392_vm5 = vcmp.gt.f32.partialorder %v1284_v36, 0.0 }
 0x2b3   : > { %v1422_v44 = vmul.f32 0.2, %v1276_v39  ;;  %v1279_v45 = vadd.f32 %v2823_v17, %v1278_v43  ;;  %2299 = vmatmul.mubr.bf16.vlgmr.msra.gmra.mrb[64].mxu0 %v1483_v31  ;;  %vm1390_vm6 = vcmp.gt.f32.partialorder %v1276_v39, 0.0 }
 0x2b4   : > { %vm1393_vm7 = vcmp.gt.f32.partialorder %v1287_v42, 0.0  ;;  %v1425_v46 = vmul.f32 0.2, %v1287_v42  ;;  %v1456_v48 = vsel %vm1392_vm5, %v1284_v36, %v1424_v41 }
 0x2b5   : > { %vm1391_vm8 = vcmp.gt.f32.partialorder %v1279_v45, 0.0  ;;  %v1423_v47 = vmul.f32 0.2, %v1279_v45  ;;  %v1454_v52 = vsel %vm1390_vm6, %v1276_v39, %v1422_v44 }
 0x2b6   : > { %v1457_v49 = vsel %vm1393_vm7, %v1287_v42, %v1425_v46 }
 0x2b7   : > { %v1485_v50 = vpack.c.bf16 %v1457_v49, %v1456_v48  ;;  %v2260_v51 = vpop.f32.mrb[40].mxu0  ;;  %v1455_v53 = vsel %vm1391_vm8, %v1279_v45, %v1423_v47 }
 0x2b8   : > { %v1300_v54 = vadd.f32 %v2260_v51, %v2823_v17  ;;  %v1291_v35 = vpop.f32.mrb[41].mxu0  ;;  %v1484_v55 = vpack.c.bf16 %v1455_v53, %v1454_v52 }
 0x2b9   : > { %v1292_v56 = vadd.f32 %v2823_v17, %v1291_v35  ;;  %v2261_v61 = vpop.f32.mrb[42].mxu0 }
 0x2ba   : > { %v1428_v62 = vmul.f32 0.2, %v1300_v54  ;;  %v1303_v63 = vadd.f32 %v2261_v61, %v2823_v17  ;;  %v1294_v0 = vpop.f32.mrb[43].mxu0  ;;  %2302 = vmatprep.mubr.bf16.mxu1 %v1484_v55  ;;  %vm1396_vm9 = vcmp.gt.f32.partialorder %v1300_v54, 0.0 }
 0x2bb   : > { %v1426_v1 = vmul.f32 0.2, %v1292_v56  ;;  %v1295_v57 = vadd.f32 %v2823_v17, %v1294_v0  ;;  %2303 = vmatmul.mubr.bf16.vlgmr.msra.gmra.mrb[32].mxu1 %v1485_v50  ;;  %vm1394_vm10 = vcmp.gt.f32.partialorder %v1292_v56, 0.0 }
 0x2bc   : > { %vm1397_vm11 = vcmp.gt.f32.partialorder %v1303_v63, 0.0  ;;  %v1429_v2 = vmul.f32 0.2, %v1303_v63  ;;  %v1460_v4 = vsel %vm1396_vm9, %v1300_v54, %v1428_v62 }
 0x2bd   : > { %vm1395_vm12 = vcmp.gt.f32.partialorder %v1295_v57, 0.0  ;;  %v1427_v3 = vmul.f32 0.2, %v1295_v57  ;;  %v1458_v7 = vsel %vm1394_vm10, %v1292_v56, %v1426_v1 }
 0x2be   : > { %v1461_v5 = vsel %vm1397_vm11, %v1303_v63, %v1429_v2 }
 0x2bf   : > { %v2264_v6 = vpop.f32.mrb[44].mxu0  ;;  %v1459_v8 = vsel %vm1395_vm12, %v1295_v57, %v1427_v3  ;;  %v1487_v9 = vpack.c.bf16 %v1461_v5, %v1460_v4 }
 0x2c0   : > { %v1316_v10 = vadd.f32 %v2264_v6, %v2823_v17  ;;  %v1307_v11 = vpop.f32.mrb[45].mxu0  ;;  %v1486_v12 = vpack.c.bf16 %v1459_v8, %v1458_v7 }
 0x2c1   : > { %v1308_v58 = vadd.f32 %v2823_v17, %v1307_v11  ;;  %v2265_v13 = vpop.f32.mrb[46].mxu0 }
 0x2c2   : > { %v1432_v14 = vmul.f32 0.2, %v1316_v10  ;;  %v1319_v15 = vadd.f32 %v2265_v13, %v2823_v17  ;;  %v1310_v16 = vpop.f32.mrb[47].mxu0  ;;  %2306 = vmatprep.mubr.bf16.mxu1 %v1486_v12  ;;  %vm1400_vm13 = vcmp.gt.f32.partialorder %v1316_v10, 0.0 }
 0x2c3   : > { %v1430_v60 = vmul.f32 0.2, %v1308_v58  ;;  %v1311_v18 = vadd.f32 %v2823_v17, %v1310_v16  ;;  %2307 = vmatmul.mubr.bf16.gmra.mrb[36].mxu1 %v1487_v9  ;;  %vm1398_vm14 = vcmp.gt.f32.partialorder %v1308_v58, 0.0 }
 0x2c4   : > { %vm1401_vm15 = vcmp.gt.f32.partialorder %v1319_v15, 0.0  ;;  %v1433_v19 = vmul.f32 0.2, %v1319_v15  ;;  %v1464_v20 = vsel %vm1400_vm13, %v1316_v10, %v1432_v14 }
 0x2c5   : > { %vm1399_vm0 = vcmp.gt.f32.partialorder %v1311_v18, 0.0  ;;  %v1431_v59 = vmul.f32 0.2, %v1311_v18  ;;  %v1462_v23 = vsel %vm1398_vm14, %v1308_v58, %v1430_v60 }
 0x2c6   : > { %v1465_v21 = vsel %vm1401_vm15, %v1319_v15, %v1433_v19 }
 0x2c7   : > { %v2268_v22 = vpop.f32.mrb[48].mxu0  ;;  %v1463_v24 = vsel %vm1399_vm0, %v1311_v18, %v1431_v59  ;;  %v1489_v25 = vpack.c.bf16 %v1465_v21, %v1464_v20 }
 0x2c8   : > { %v1332_v26 = vadd.f32 %v2268_v22, %v2823_v17  ;;  %v1323_v27 = vpop.f32.mrb[49].mxu0  ;;  %v1488_v28 = vpack.c.bf16 %v1463_v24, %v1462_v23 }
 0x2c9   : > { %v1324_v29 = vadd.f32 %v2823_v17, %v1323_v27  ;;  %v2269_v30 = vpop.f32.mrb[50].mxu0 }
 0x2ca   : > { %v1436_v31 = vmul.f32 0.2, %v1332_v26  ;;  %v1335_v32 = vadd.f32 %v2269_v30, %v2823_v17  ;;  %v1326_v33 = vpop.f32.mrb[51].mxu0  ;;  %2310 = vmatprep.mubr.bf16.mxu1 %v1488_v28  ;;  %vm1404_vm1 = vcmp.gt.f32.partialorder %v1332_v26, 0.0 }
 0x2cb   : > { %v1434_v34 = vmul.f32 0.2, %v1324_v29  ;;  %v1327_v36 = vadd.f32 %v2823_v17, %v1326_v33  ;;  %2311 = vmatmul.mubr.bf16.gmra.mrb[40].mxu1 %v1489_v25  ;;  %vm1402_vm2 = vcmp.gt.f32.partialorder %v1324_v29, 0.0 }
 0x2cc   : > { %vm1405_vm3 = vcmp.gt.f32.partialorder %v1335_v32, 0.0  ;;  %v1437_v37 = vmul.f32 0.2, %v1335_v32  ;;  %v1468_v39 = vsel %vm1404_vm1, %v1332_v26, %v1436_v31  ;;  %vm1890_vm1 = vcmask 7168  }
 0x2cd   : > { %vm1403_vm4 = vcmp.gt.f32.partialorder %v1327_v36, 0.0  ;;  %v1435_v38 = vmul.f32 0.2, %v1327_v36  ;;  %v1466_v42 = vsel %vm1402_vm2, %v1324_v29, %v1434_v34 }
 0x2ce   : > { %v1469_v40 = vsel %vm1405_vm3, %v1335_v32, %v1437_v37 }
 0x2cf   : > { %v2272_v41 = vpop.f32.mrb[52].mxu0  ;;  %v1467_v43 = vsel %vm1403_vm4, %v1327_v36, %v1435_v38  ;;  %v1491_v44 = vpack.c.bf16 %v1469_v40, %v1468_v39  ;;  %v2860_v36 = vld [vmem:[%s2975_s8] ss:$0 sm:$0xff] }
 0x2d0   : > { %v1348_v45 = vadd.f32 %v2272_v41, %v2823_v17  ;;  %v1339_v46 = vpop.f32.mrb[53].mxu0  ;;  %v1490_v47 = vpack.c.bf16 %v1467_v43, %v1466_v42 }
 0x2d1   : > { %v1340_v48 = vadd.f32 %v2823_v17, %v1339_v46  ;;  %v2273_v49 = vpop.f32.mrb[54].mxu0 }
 0x2d2   : > { %v1440_v50 = vmul.f32 0.2, %v1348_v45  ;;  %v1351_v51 = vadd.f32 %v2273_v49, %v2823_v17  ;;  %v1342_v52 = vpop.f32.mrb[55].mxu0  ;;  %2314 = vmatprep.mubr.bf16.mxu1 %v1490_v47  ;;  %vm1408_vm5 = vcmp.gt.f32.partialorder %v1348_v45, 0.0 }
 0x2d3   : > { %v1438_v53 = vmul.f32 0.2, %v1340_v48  ;;  %v1343_v54 = vadd.f32 %v2823_v17, %v1342_v52  ;;  %2315 = vmatmul.mubr.bf16.gmra.mrb[44].mxu1 %v1491_v44  ;;  %vm1406_vm6 = vcmp.gt.f32.partialorder %v1340_v48, 0.0 }
 0x2d4   : > { %vm1409_vm7 = vcmp.gt.f32.partialorder %v1351_v51, 0.0  ;;  %v1441_v35 = vmul.f32 0.2, %v1351_v51  ;;  %v1472_v56 = vsel %vm1408_vm5, %v1348_v45, %v1440_v50 }
 0x2d5   : > { %vm1407_vm8 = vcmp.gt.f32.partialorder %v1343_v54, 0.0  ;;  %v1439_v55 = vmul.f32 0.2, %v1343_v54  ;;  %v1470_v63 = vsel %vm1406_vm6, %v1340_v48, %v1438_v53 }
 0x2d6   : > { %v1473_v61 = vsel %vm1409_vm7, %v1351_v51, %v1441_v35 }
 0x2d7   : > { %v2276_v62 = vpop.f32.mrb[56].mxu0  ;;  %v1471_v0 = vsel %vm1407_vm8, %v1343_v54, %v1439_v55  ;;  %v1493_v1 = vpack.c.bf16 %v1473_v61, %v1472_v56 }
 0x2d8   : > { %v1364_v57 = vadd.f32 %v2276_v62, %v2823_v17  ;;  %v1355_v2 = vpop.f32.mrb[57].mxu0  ;;  %v1492_v3 = vpack.c.bf16 %v1471_v0, %v1470_v63 }
 0x2d9   : > { %v1356_v4 = vadd.f32 %v2823_v17, %v1355_v2  ;;  %v2277_v5 = vpop.f32.mrb[58].mxu0 }
 0x2da   : > { %v1444_v6 = vmul.f32 0.2, %v1364_v57  ;;  %v1367_v7 = vadd.f32 %v2277_v5, %v2823_v17  ;;  %v1358_v8 = vpop.f32.mrb[59].mxu0  ;;  %2318 = vmatprep.mubr.bf16.mxu1 %v1492_v3  ;;  %vm1412_vm9 = vcmp.gt.f32.partialorder %v1364_v57, 0.0 }
 0x2db   : > { %v1442_v9 = vmul.f32 0.2, %v1356_v4  ;;  %v1359_v10 = vadd.f32 %v2823_v17, %v1358_v8  ;;  %2319 = vmatmul.mubr.bf16.gmra.mrb[48].mxu1 %v1493_v1  ;;  %vm1410_vm10 = vcmp.gt.f32.partialorder %v1356_v4, 0.0 }
 0x2dc   : > { %vm1413_vm11 = vcmp.gt.f32.partialorder %v1367_v7, 0.0  ;;  %v1445_v11 = vmul.f32 0.2, %v1367_v7  ;;  %v1476_v58 = vsel %vm1412_vm9, %v1364_v57, %v1444_v6 }
 0x2dd   : > { %vm1411_vm12 = vcmp.gt.f32.partialorder %v1359_v10, 0.0  ;;  %v1443_v12 = vmul.f32 0.2, %v1359_v10  ;;  %v1474_v15 = vsel %vm1410_vm10, %v1356_v4, %v1442_v9 }
 0x2de   : > { %v1477_v13 = vsel %vm1413_vm11, %v1367_v7, %v1445_v11 }
 0x2df   : > { %v2280_v14 = vpop.f32.mrb[60].mxu0  ;;  %v1475_v16 = vsel %vm1411_vm12, %v1359_v10, %v1443_v12  ;;  %v1495_v60 = vpack.c.bf16 %v1477_v13, %v1476_v58 }
 0x2e0   : > { %v1380_v18 = vadd.f32 %v2280_v14, %v2823_v17  ;;  %v1371_v19 = vpop.f32.mrb[61].mxu0  ;;  %v1494_v59 = vpack.c.bf16 %v1475_v16, %v1474_v15 }
 0x2e1   : > { %v1372_v20 = vadd.f32 %v2823_v17, %v1371_v19  ;;  %v2281_v21 = vpop.f32.mrb[62].mxu0 }
 0x2e2   : > { %v1448_v22 = vmul.f32 0.2, %v1380_v18  ;;  %v1383_v23 = vadd.f32 %v2281_v21, %v2823_v17  ;;  %v1374_v24 = vpop.f32.mrb[63].mxu0  ;;  %2322 = vmatprep.mubr.bf16.mxu1 %v1494_v59  ;;  %vm1416_vm13 = vcmp.gt.f32.partialorder %v1380_v18, 0.0 }
 0x2e3   : > { %v1446_v25 = vmul.f32 0.2, %v1372_v20  ;;  %v1375_v26 = vadd.f32 %v2823_v17, %v1374_v24  ;;  %2323 = vmatmul.mubr.bf16.gmra.mrb[52].mxu1 %v1495_v60  ;;  %vm1414_vm14 = vcmp.gt.f32.partialorder %v1372_v20, 0.0 }
 0x2e4   : > { %vm1417_vm15 = vcmp.gt.f32.partialorder %v1383_v23, 0.0  ;;  %v1449_v27 = vmul.f32 0.2, %v1383_v23  ;;  %v1480_v29 = vsel %vm1416_vm13, %v1380_v18, %v1448_v22 }
 0x2e5   : > { %vm1415_vm0 = vcmp.gt.f32.partialorder %v1375_v26, 0.0  ;;  %v1447_v28 = vmul.f32 0.2, %v1375_v26  ;;  %v1478_v31 = vsel %vm1414_vm14, %v1372_v20, %v1446_v25 }
 0x2e6   : > { %v1481_v30 = vsel %vm1417_vm15, %v1383_v23, %v1449_v27 }
 0x2e7   : > { %v1479_v32 = vsel %vm1415_vm0, %v1375_v26, %v1447_v28  ;;  %v1497_v33 = vpack.c.bf16 %v1481_v30, %v1480_v29 }
 0x2e8   : > { %v1496_v34 = vpack.c.bf16 %v1479_v32, %v1478_v31 }
 0x2ea   : > { %2326 = vmatprep.mubr.bf16.mxu1 %v1496_v34 }
 0x2eb   : > { %2327 = vmatmul.mubr.bf16.gmra.mrb[56].mxu1 %v1497_v33 }
 0x386   : > { %v2300_v17 = vpop.f32.mrb[64].mxu0 }
 0x387   : > { %v1612_v37 = vadd.f32 %v2300_v17, %v2860_v36  ;;  %v1603_v38 = vpop.f32.mrb[65].mxu0 }
 0x388   : > { %v1604_v39 = vadd.f32 %v2860_v36, %v1603_v38  ;;  %v2301_v40 = vpop.f32.mrb[66].mxu0 }
 0x389   : > { %v1732_v41 = vsub.f32 0.0, %v1612_v37  ;;  %v1615_v42 = vadd.f32 %v2301_v40, %v2860_v36  ;;  %v1606_v43 = vpop.f32.mrb[67].mxu0 }
 0x38a   : > { %v1730_v44 = vsub.f32 0.0, %v1604_v39  ;;  %v1607_v45 = vadd.f32 %v2860_v36, %v1606_v43 }
 0x38b   : > { %v1766_v46 = vmul.f32 1.442695, %v1732_v41  ;;  %v1733_v47 = vsub.f32 0.0, %v1615_v42 }
 0x38c   : > { %v1762_v48 = vmul.f32 1.442695, %v1730_v44  ;;  %v1731_v49 = vsub.f32 0.0, %v1607_v45 }
 0x38d   : > { %2398 = vpow2.f32 %v1766_v46  ;;  %v1768_v50 = vmul.f32 1.442695, %v1733_v47 }
 0x38e   : > { %2400 = vpow2.f32 %v1762_v48  ;;  %v1764_v51 = vmul.f32 1.442695, %v1731_v49  ;;  %v2304_v52 = vpop.f32.mrb[32].mxu1 }
 0x38f   : > { %2402 = vpow2.f32 %v1768_v50  ;;  %v1628_v53 = vadd.f32 %v2304_v52, %v2860_v36  ;;  %v1619_v54 = vpop.f32.mrb[33].mxu1 }
 0x390   : > { %2404 = vpow2.f32 %v1764_v51  ;;  %v1620_v35 = vadd.f32 %v2860_v36, %v1619_v54  ;;  %v2305_v55 = vpop.f32.mrb[34].mxu1 }
 0x391   : > { %v1736_v56 = vsub.f32 0.0, %v1628_v53  ;;  %v1631_v61 = vadd.f32 %v2305_v55, %v2860_v36  ;;  %v1622_v62 = vpop.f32.mrb[35].mxu1 }
 0x392   : > { %v1734_v63 = vsub.f32 0.0, %v1620_v35  ;;  %v1623_v0 = vadd.f32 %v2860_v36, %v1622_v62 }
 0x393   : > { %v1774_v1 = vmul.f32 1.442695, %v1736_v56  ;;  %v1737_v57 = vsub.f32 0.0, %v1631_v61 }
 0x394   : > { %v1770_v2 = vmul.f32 1.442695, %v1734_v63  ;;  %v1735_v3 = vsub.f32 0.0, %v1623_v0 }
 0x395   : > { %2406 = vpow2.f32 %v1774_v1  ;;  %v1776_v4 = vmul.f32 1.442695, %v1737_v57 }
 0x396   : > { %2408 = vpow2.f32 %v1770_v2  ;;  %v1772_v5 = vmul.f32 1.442695, %v1735_v3  ;;  %v2308_v6 = vpop.f32.mrb[36].mxu1 }
 0x397   : > { %v2399_v7 = vpop.eup %2398  ;;  %2410 = vpow2.f32 %v1776_v4  ;;  %v1644_v8 = vadd.f32 %v2308_v6, %v2860_v36  ;;  %v1635_v9 = vpop.f32.mrb[37].mxu1 }
 0x398   : > { %v2401_v10 = vpop.eup %2400  ;;  %v1828_v11 = vadd.f32 1.0, %v2399_v7  ;;  %2412 = vpow2.f32 %v1772_v5  ;;  %v1636_v12 = vadd.f32 %v2860_v36, %v1635_v9  ;;  %v2309_v58 = vpop.f32.mrb[38].mxu1 }
 0x399   : > { %v2403_v13 = vpop.eup %2402  ;;  %v1826_v14 = vadd.f32 1.0, %v2401_v10  ;;  %v1740_v15 = vsub.f32 0.0, %v1644_v8  ;;  %v1647_v16 = vadd.f32 %v2309_v58, %v2860_v36  ;;  %v1638_v60 = vpop.f32.mrb[39].mxu1 }
 0x39a   : > { %v2405_v18 = vpop.eup %2404  ;;  %2414 = vrcp.f32 %v1828_v11  ;;  %v1829_v19 = vadd.f32 1.0, %v2403_v13  ;;  %v1738_v59 = vsub.f32 0.0, %v1636_v12  ;;  %v1639_v20 = vadd.f32 %v2860_v36, %v1638_v60 }
 0x39b   : > { %2416 = vrcp.f32 %v1826_v14  ;;  %v1827_v21 = vadd.f32 1.0, %v2405_v18  ;;  %v1782_v22 = vmul.f32 1.442695, %v1740_v15  ;;  %v1741_v23 = vsub.f32 0.0, %v1647_v16 }
 0x39c   : > { %2418 = vrcp.f32 %v1829_v19  ;;  %v1778_v24 = vmul.f32 1.442695, %v1738_v59  ;;  %v1739_v25 = vsub.f32 0.0, %v1639_v20 }
 0x39d   : > { %2420 = vrcp.f32 %v1827_v21  ;;  %v1784_v26 = vmul.f32 1.442695, %v1741_v23 }
 0x39e   : > { %2422 = vpow2.f32 %v1782_v22  ;;  %v1780_v27 = vmul.f32 1.442695, %v1739_v25  ;;  %v2312_v28 = vpop.f32.mrb[40].mxu1 }
 0x39f   : > { %v2407_v29 = vpop.eup %2406  ;;  %2424 = vpow2.f32 %v1778_v24  ;;  %v1660_v30 = vadd.f32 %v2312_v28, %v2860_v36  ;;  %v1651_v31 = vpop.f32.mrb[41].mxu1 }
 0x3a0   : > { %v2409_v32 = vpop.eup %2408  ;;  %v1832_v33 = vadd.f32 1.0, %v2407_v29  ;;  %2426 = vpow2.f32 %v1784_v26  ;;  %v1652_v34 = vadd.f32 %v2860_v36, %v1651_v31  ;;  %v2313_v17 = vpop.f32.mrb[42].mxu1 }
 0x3a1   : > { %v2411_v37 = vpop.eup %2410  ;;  %v1830_v38 = vadd.f32 1.0, %v2409_v32  ;;  %2428 = vpow2.f32 %v1780_v27  ;;  %v1744_v39 = vsub.f32 0.0, %v1660_v30  ;;  %v1663_v40 = vadd.f32 %v2313_v17, %v2860_v36  ;;  %v1654_v41 = vpop.f32.mrb[43].mxu1 }
 0x3a2   : > { %v2413_v42 = vpop.eup %2412  ;;  %2430 = vrcp.f32 %v1832_v33  ;;  %v1833_v43 = vadd.f32 1.0, %v2411_v37  ;;  %v1742_v44 = vsub.f32 0.0, %v1652_v34  ;;  %v1655_v45 = vadd.f32 %v2860_v36, %v1654_v41 }
 0x3a3   : > { %2432 = vrcp.f32 %v1830_v38  ;;  %v1831_v46 = vadd.f32 1.0, %v2413_v42  ;;  %v1790_v47 = vmul.f32 1.442695, %v1744_v39  ;;  %v1745_v48 = vsub.f32 0.0, %v1663_v40 }
 0x3a4   : > { %v2415_v49 = vpop.eup %2414  ;;  %2434 = vrcp.f32 %v1833_v43  ;;  %v1786_v50 = vmul.f32 1.442695, %v1742_v44  ;;  %v1743_v51 = vsub.f32 0.0, %v1655_v45 }
 0x3a5   : > { %v2417_v52 = vpop.eup %2416  ;;  %1893 = vst.msk [vmem:[%s2881_s25 + $0x10] sm:$0xff] %vm1890_vm1, %v2415_v49  ;;  %2436 = vrcp.f32 %v1831_v46  ;;  %v1792_v53 = vmul.f32 1.442695, %v1745_v48 }
 0x3a6   : > { %v2419_v54 = vpop.eup %2418  ;;  %1891 = vst.msk [vmem:[%s2881_s25] sm:$0xff] %vm1890_vm1, %v2417_v52  ;;  %2438 = vpow2.f32 %v1790_v47  ;;  %v1788_v35 = vmul.f32 1.442695, %v1743_v51  ;;  %v2316_v55 = vpop.f32.mrb[44].mxu1 }
 0x3a7   : > { %v2421_v56 = vpop.eup %2420  ;;  %1894 = vst.msk [vmem:[%s2881_s25 + $0x18] sm:$0xff] %vm1890_vm1, %v2419_v54  ;;  %2440 = vpow2.f32 %v1786_v50  ;;  %v1676_v61 = vadd.f32 %v2316_v55, %v2860_v36  ;;  %v1667_v62 = vpop.f32.mrb[45].mxu1 }
 0x3a8   : > { %v2423_v63 = vpop.eup %2422  ;;  %1892 = vst.msk [vmem:[%s2881_s25 + $0x8] sm:$0xff] %vm1890_vm1, %v2421_v56  ;;  %2442 = vpow2.f32 %v1792_v53  ;;  %v1668_v0 = vadd.f32 %v2860_v36, %v1667_v62  ;;  %v2317_v1 = vpop.f32.mrb[46].mxu1 }
 0x3a9   : > { %v2425_v57 = vpop.eup %2424  ;;  %v1836_v2 = vadd.f32 1.0, %v2423_v63  ;;  %2444 = vpow2.f32 %v1788_v35  ;;  %v1748_v3 = vsub.f32 0.0, %v1676_v61  ;;  %v1679_v4 = vadd.f32 %v2317_v1, %v2860_v36  ;;  %v1670_v5 = vpop.f32.mrb[47].mxu1 }
 0x3aa   : > { %v2427_v6 = vpop.eup %2426  ;;  %v1834_v7 = vadd.f32 1.0, %v2425_v57  ;;  %v1746_v8 = vsub.f32 0.0, %v1668_v0  ;;  %v1671_v9 = vadd.f32 %v2860_v36, %v1670_v5 }
 0x3ab   : > { %v2429_v10 = vpop.eup %2428  ;;  %2446 = vrcp.f32 %v1836_v2  ;;  %v1837_v11 = vadd.f32 1.0, %v2427_v6  ;;  %v1798_v12 = vmul.f32 1.442695, %v1748_v3  ;;  %v1749_v58 = vsub.f32 0.0, %v1679_v4 }
 0x3ac   : > { %v2431_v13 = vpop.eup %2430  ;;  %2448 = vrcp.f32 %v1834_v7  ;;  %v1835_v14 = vadd.f32 1.0, %v2429_v10  ;;  %v1794_v15 = vmul.f32 1.442695, %v1746_v8  ;;  %v1747_v16 = vsub.f32 0.0, %v1671_v9 }
 0x3ad   : > { %v2433_v60 = vpop.eup %2432  ;;  %1897 = vst.msk [vmem:[%s2881_s25 + $0x30] sm:$0xff] %vm1890_vm1, %v2431_v13  ;;  %2450 = vrcp.f32 %v1837_v11  ;;  %v1800_v18 = vmul.f32 1.442695, %v1749_v58 }
 0x3ae   : > { %v2435_v19 = vpop.eup %2434  ;;  %1895 = vst.msk [vmem:[%s2881_s25 + $0x20] sm:$0xff] %vm1890_vm1, %v2433_v60  ;;  %2452 = vrcp.f32 %v1835_v14  ;;  %v1796_v59 = vmul.f32 1.442695, %v1747_v16  ;;  %v2320_v20 = vpop.f32.mrb[48].mxu1 }
 0x3af   : > { %v2437_v21 = vpop.eup %2436  ;;  %1898 = vst.msk [vmem:[%s2881_s25 + $0x38] sm:$0xff] %vm1890_vm1, %v2435_v19  ;;  %2454 = vpow2.f32 %v1798_v12  ;;  %v1692_v22 = vadd.f32 %v2320_v20, %v2860_v36  ;;  %v1683_v23 = vpop.f32.mrb[49].mxu1 }
 0x3b0   : > { %v2439_v24 = vpop.eup %2438  ;;  %1896 = vst.msk [vmem:[%s2881_s25 + $0x28] sm:$0xff] %vm1890_vm1, %v2437_v21  ;;  %2456 = vpow2.f32 %v1794_v15  ;;  %v1684_v25 = vadd.f32 %v2860_v36, %v1683_v23  ;;  %v2321_v26 = vpop.f32.mrb[50].mxu1 }
 0x3b1   : > { %v2441_v27 = vpop.eup %2440  ;;  %v1840_v28 = vadd.f32 1.0, %v2439_v24  ;;  %2458 = vpow2.f32 %v1800_v18  ;;  %v1752_v29 = vsub.f32 0.0, %v1692_v22  ;;  %v1695_v30 = vadd.f32 %v2321_v26, %v2860_v36  ;;  %v1686_v31 = vpop.f32.mrb[51].mxu1 }
 0x3b2   : > { %v2443_v32 = vpop.eup %2442  ;;  %v1838_v33 = vadd.f32 1.0, %v2441_v27  ;;  %2460 = vpow2.f32 %v1796_v59  ;;  %v1750_v34 = vsub.f32 0.0, %v1684_v25  ;;  %v1687_v17 = vadd.f32 %v2860_v36, %v1686_v31 }
 0x3b3   : > { %v2445_v37 = vpop.eup %2444  ;;  %2462 = vrcp.f32 %v1840_v28  ;;  %v1841_v38 = vadd.f32 1.0, %v2443_v32  ;;  %v1806_v39 = vmul.f32 1.442695, %v1752_v29  ;;  %v1753_v40 = vsub.f32 0.0, %v1695_v30 }
 0x3b4   : > { %2464 = vrcp.f32 %v1838_v33  ;;  %v1839_v41 = vadd.f32 1.0, %v2445_v37  ;;  %v1802_v42 = vmul.f32 1.442695, %v1750_v34  ;;  %v1751_v43 = vsub.f32 0.0, %v1687_v17 }
 0x3b5   : > { %v2447_v44 = vpop.eup %2446  ;;  %2466 = vrcp.f32 %v1841_v38  ;;  %v1808_v45 = vmul.f32 1.442695, %v1753_v40 }
 0x3b6   : > { %v2449_v46 = vpop.eup %2448  ;;  %1901 = vst.msk [vmem:[%s2881_s25 + $0x50] sm:$0xff] %vm1890_vm1, %v2447_v44  ;;  %2468 = vrcp.f32 %v1839_v41  ;;  %v1804_v47 = vmul.f32 1.442695, %v1751_v43  ;;  %v2324_v48 = vpop.f32.mrb[52].mxu1 }
 0x3b7   : > { %v2451_v49 = vpop.eup %2450  ;;  %1899 = vst.msk [vmem:[%s2881_s25 + $0x40] sm:$0xff] %vm1890_vm1, %v2449_v46  ;;  %2470 = vpow2.f32 %v1806_v39  ;;  %v1708_v50 = vadd.f32 %v2324_v48, %v2860_v36  ;;  %v1699_v51 = vpop.f32.mrb[53].mxu1 }
 0x3b8   : > { %v2453_v52 = vpop.eup %2452  ;;  %1902 = vst.msk [vmem:[%s2881_s25 + $0x58] sm:$0xff] %vm1890_vm1, %v2451_v49  ;;  %2472 = vpow2.f32 %v1802_v42  ;;  %v1700_v53 = vadd.f32 %v2860_v36, %v1699_v51  ;;  %v2325_v54 = vpop.f32.mrb[54].mxu1 }
 0x3b9   : > { %v2455_v35 = vpop.eup %2454  ;;  %1900 = vst.msk [vmem:[%s2881_s25 + $0x48] sm:$0xff] %vm1890_vm1, %v2453_v52  ;;  %2474 = vpow2.f32 %v1808_v45  ;;  %v1756_v55 = vsub.f32 0.0, %v1708_v50  ;;  %v1711_v56 = vadd.f32 %v2325_v54, %v2860_v36  ;;  %v1702_v61 = vpop.f32.mrb[55].mxu1 }
 0x3ba   : > { %v2457_v62 = vpop.eup %2456  ;;  %v1844_v63 = vadd.f32 1.0, %v2455_v35  ;;  %2476 = vpow2.f32 %v1804_v47  ;;  %v1754_v0 = vsub.f32 0.0, %v1700_v53  ;;  %v1703_v1 = vadd.f32 %v2860_v36, %v1702_v61 }
 0x3bb   : > { %v2459_v57 = vpop.eup %2458  ;;  %v1842_v2 = vadd.f32 1.0, %v2457_v62  ;;  %v1757_v3 = vsub.f32 0.0, %v1711_v56  ;;  %v1814_v6 = vmul.f32 1.442695, %v1756_v55 }
 0x3bc   : > { %v2461_v4 = vpop.eup %2460  ;;  %2478 = vrcp.f32 %v1844_v63  ;;  %v1845_v5 = vadd.f32 1.0, %v2459_v57  ;;  %v1755_v7 = vsub.f32 0.0, %v1703_v1  ;;  %v1810_v10 = vmul.f32 1.442695, %v1754_v0 }
 0x3bd   : > { %v2463_v8 = vpop.eup %2462  ;;  %2480 = vrcp.f32 %v1842_v2  ;;  %v1843_v9 = vadd.f32 1.0, %v2461_v4  ;;  %v1816_v12 = vmul.f32 1.442695, %v1757_v3 }
 0x3be   : > { %v2465_v11 = vpop.eup %2464  ;;  %1905 = vst.msk [vmem:[%s2881_s25 + $0x70] sm:$0xff] %vm1890_vm1, %v2463_v8  ;;  %2482 = vrcp.f32 %v1845_v5  ;;  %v2328_v58 = vpop.f32.mrb[56].mxu1  ;;  %v1812_v14 = vmul.f32 1.442695, %v1755_v7 }
 0x3bf   : > { %v2467_v13 = vpop.eup %2466  ;;  %1903 = vst.msk [vmem:[%s2881_s25 + $0x60] sm:$0xff] %vm1890_vm1, %v2465_v11  ;;  %2484 = vrcp.f32 %v1843_v9  ;;  %v1724_v15 = vadd.f32 %v2328_v58, %v2860_v36  ;;  %v1715_v16 = vpop.f32.mrb[57].mxu1 }
 0x3c0   : > { %v2469_v60 = vpop.eup %2468  ;;  %1906 = vst.msk [vmem:[%s2881_s25 + $0x78] sm:$0xff] %vm1890_vm1, %v2467_v13  ;;  %2486 = vpow2.f32 %v1814_v6  ;;  %v1716_v18 = vadd.f32 %v2860_v36, %v1715_v16  ;;  %v2329_v19 = vpop.f32.mrb[58].mxu1 }
 0x3c1   : > { %v2471_v59 = vpop.eup %2470  ;;  %1904 = vst.msk [vmem:[%s2881_s25 + $0x68] sm:$0xff] %vm1890_vm1, %v2469_v60  ;;  %2488 = vpow2.f32 %v1810_v10  ;;  %v1760_v20 = vsub.f32 0.0, %v1724_v15  ;;  %v1727_v21 = vadd.f32 %v2329_v19, %v2860_v36  ;;  %v1718_v22 = vpop.f32.mrb[59].mxu1 }
 0x3c2   : > { %v2473_v23 = vpop.eup %2472  ;;  %v1848_v24 = vadd.f32 1.0, %v2471_v59  ;;  %2490 = vpow2.f32 %v1816_v12  ;;  %v1758_v25 = vsub.f32 0.0, %v1716_v18  ;;  %v1719_v26 = vadd.f32 %v2860_v36, %v1718_v22 }
 0x3c3   : > { %v2475_v27 = vpop.eup %2474  ;;  %v1846_v28 = vadd.f32 1.0, %v2473_v23  ;;  %2492 = vpow2.f32 %v1812_v14  ;;  %v1761_v29 = vsub.f32 0.0, %v1727_v21  ;;  %v1822_v32 = vmul.f32 1.442695, %v1760_v20 }
 0x3c4   : > { %v2477_v30 = vpop.eup %2476  ;;  %2494 = vrcp.f32 %v1848_v24  ;;  %v1849_v31 = vadd.f32 1.0, %v2475_v27  ;;  %v1759_v33 = vsub.f32 0.0, %v1719_v26  ;;  %v1818_v17 = vmul.f32 1.442695, %v1758_v25 }
 0x3c5   : > { %2496 = vrcp.f32 %v1846_v28  ;;  %v1847_v34 = vadd.f32 1.0, %v2477_v30  ;;  %v1824_v38 = vmul.f32 1.442695, %v1761_v29 }
 0x3c6   : > { %v2479_v37 = vpop.eup %2478  ;;  %2498 = vrcp.f32 %v1849_v31  ;;  %v1820_v39 = vmul.f32 1.442695, %v1759_v33 }
 0x3c7   : > { %v2481_v36 = vpop.eup %2480  ;;  %1909 = vst.msk [vmem:[%s2881_s25 + $0x90] sm:$0xff] %vm1890_vm1, %v2479_v37  ;;  %2500 = vrcp.f32 %v1847_v34 }
 0x3c8   : > { %v2483_v40 = vpop.eup %2482  ;;  %1907 = vst.msk [vmem:[%s2881_s25 + $0x80] sm:$0xff] %vm1890_vm1, %v2481_v36  ;;  %2502 = vpow2.f32 %v1822_v32 }
 0x3c9   : > { %v2485_v41 = vpop.eup %2484  ;;  %1910 = vst.msk [vmem:[%s2881_s25 + $0x98] sm:$0xff] %vm1890_vm1, %v2483_v40  ;;  %2504 = vpow2.f32 %v1818_v17 }
 0x3ca   : > { %v2487_v42 = vpop.eup %2486  ;;  %1908 = vst.msk [vmem:[%s2881_s25 + $0x88] sm:$0xff] %vm1890_vm1, %v2485_v41  ;;  %2506 = vpow2.f32 %v1824_v38 }
 0x3cb   : > { %v2489_v43 = vpop.eup %2488  ;;  %v1852_v44 = vadd.f32 1.0, %v2487_v42  ;;  %2508 = vpow2.f32 %v1820_v39 }
 0x3cc   : > { %v2491_v45 = vpop.eup %2490  ;;  %v1850_v46 = vadd.f32 1.0, %v2489_v43 }
 0x3cd   : > { %v2493_v47 = vpop.eup %2492  ;;  %2510 = vrcp.f32 %v1852_v44  ;;  %v1853_v48 = vadd.f32 1.0, %v2491_v45 }
 0x3ce   : > { %v2495_v49 = vpop.eup %2494  ;;  %2512 = vrcp.f32 %v1850_v46  ;;  %v1851_v50 = vadd.f32 1.0, %v2493_v47 }
 0x3cf   : > { %v2497_v51 = vpop.eup %2496  ;;  %1913 = vst.msk [vmem:[%s2881_s25 + $0xb0] sm:$0xff] %vm1890_vm1, %v2495_v49  ;;  %2514 = vrcp.f32 %v1853_v48 }
 0x3d0   : > { %v2499_v52 = vpop.eup %2498  ;;  %1911 = vst.msk [vmem:[%s2881_s25 + $0xa0] sm:$0xff] %vm1890_vm1, %v2497_v51  ;;  %2516 = vrcp.f32 %v1851_v50 }
 0x3d1   : > { %v2501_v53 = vpop.eup %2500  ;;  %1914 = vst.msk [vmem:[%s2881_s25 + $0xb8] sm:$0xff] %vm1890_vm1, %v2499_v52 }
 0x3d2   : > { %v2503_v54 = vpop.eup %2502  ;;  %1912 = vst.msk [vmem:[%s2881_s25 + $0xa8] sm:$0xff] %vm1890_vm1, %v2501_v53 }
 0x3d3   : > { %v2505_v35 = vpop.eup %2504  ;;  %v1856_v55 = vadd.f32 1.0, %v2503_v54 }
 0x3d4   : > { %v2507_v56 = vpop.eup %2506  ;;  %v1854_v61 = vadd.f32 1.0, %v2505_v35 }
 0x3d5   : > { %v2509_v62 = vpop.eup %2508  ;;  %2518 = vrcp.f32 %v1856_v55  ;;  %v1857_v63 = vadd.f32 1.0, %v2507_v56 }
 0x3d6   : > { %2520 = vrcp.f32 %v1854_v61  ;;  %v1855_v0 = vadd.f32 1.0, %v2509_v62 }
 0x3d7   : > { %v2511_v1 = vpop.eup %2510  ;;  %2522 = vrcp.f32 %v1857_v63 }
 0x3d8   : > { %v2513_v57 = vpop.eup %2512  ;;  %1917 = vst.msk [vmem:[%s2881_s25 + $0xd0] sm:$0xff] %vm1890_vm1, %v2511_v1  ;;  %2524 = vrcp.f32 %v1855_v0 }
 0x3d9   : > { %v2515_v2 = vpop.eup %2514  ;;  %1915 = vst.msk [vmem:[%s2881_s25 + $0xc0] sm:$0xff] %vm1890_vm1, %v2513_v57 }
 0x3da   : > { %v2517_v3 = vpop.eup %2516  ;;  %1918 = vst.msk [vmem:[%s2881_s25 + $0xd8] sm:$0xff] %vm1890_vm1, %v2515_v2 }
 0x3db   : > { %1916 = vst.msk [vmem:[%s2881_s25 + $0xc8] sm:$0xff] %vm1890_vm1, %v2517_v3 }
 0x3df   : > { %v2519_v4 = vpop.eup %2518 }
 0x3e0   : > { %v2521_v5 = vpop.eup %2520  ;;  %1921 = vst.msk [vmem:[%s2881_s25 + $0xf0] sm:$0xff] %vm1890_vm1, %v2519_v4 }
 0x3e1   : > { %v2523_v6 = vpop.eup %2522  ;;  %1919 = vst.msk [vmem:[%s2881_s25 + $0xe0] sm:$0xff] %vm1890_vm1, %v2521_v5 }
 0x3e2   : > { %v2525_v7 = vpop.eup %2524  ;;  %1922 = vst.msk [vmem:[%s2881_s25 + $0xf8] sm:$0xff] %vm1890_vm1, %v2523_v6 }
 0x3e3   : > { %1920 = vst.msk [vmem:[%s2881_s25 + $0xe8] sm:$0xff] %vm1890_vm1, %v2525_v7 }
 0x3e4 PF: > { %s19_s30 = sadd.s32 1, %s2532_s30  }
 0x3e5   : > { %p16_p4 = scmp.ge.s32.totalorder %s19_s30, 4  }
 0x3e7   :  { %18 = sbr.rel (!%p16_p4) target bundleno = 1 (0x1), region = 86 }

</bundles_post_ra>
